<compile_context>
chip_gen: v6e
topology: v6e:2x2x1
jax: 0.10.0
libtpu: 0.0.40
codegen_flags: <defaults>
</compile_context>

<pallas_src>
import jax
import jax.numpy as jnp
from jax.experimental import pallas as pl
from jax.experimental.pallas import tpu as pltpu

_EPS_BN = 1e-5
_EPS_COS = 1e-8


# --------------------------------------------------------------------------
# BlockSpec helpers
# --------------------------------------------------------------------------
def _rep_spec(shape):
    """Full-array block, same block for every grid step (shared weights)."""
    zero = (0,) * len(shape)
    return pl.BlockSpec(tuple(shape), lambda v, _z=zero: _z)


def _view_spec(full_shape):
    """Leading axis indexes the view; one view per grid step."""
    block = (1,) + tuple(full_shape[1:])
    rest = (0,) * (len(full_shape) - 1)
    return pl.BlockSpec(block, lambda v, _r=rest: (v,) + _r)


# --------------------------------------------------------------------------
# In-kernel math helpers (pure jnp, traced inline)
# --------------------------------------------------------------------------
def _bn_rows(h, g, b, relu):
    """Train-mode BatchNorm1d over the batch (row) axis of an (M, C) tile."""
    m = h.shape[0]
    s1 = jnp.sum(h, axis=0, keepdims=True)
    s2 = jnp.sum(h * h, axis=0, keepdims=True)
    mean = s1 * (1.0 / m)
    var = jnp.maximum(s2 * (1.0 / m) - mean * mean, 0.0)  # single pass, biased
    y = (h - mean) * jax.lax.rsqrt(var + _EPS_BN) * g + b
    return jnp.maximum(y, 0.0) if relu else y


def _bn_lanes(h, g, b, relu):
    """Train-mode BatchNorm2d: stats over the lane (N*H*W) axis of (C, M)."""
    m = h.shape[-1]
    s1 = jnp.sum(h, axis=-1, keepdims=True)
    s2 = jnp.sum(h * h, axis=-1, keepdims=True)
    mean = s1 * (1.0 / m)
    var = jnp.maximum(s2 * (1.0 / m) - mean * mean, 0.0)
    y = (h - mean) * jax.lax.rsqrt(var + _EPS_BN) * g + b
    return jnp.maximum(y, 0.0) if relu else y


def _row_cos(p, z):
    """F.cosine_similarity over the last axis of (M, C) tiles -> (M, 1)."""
    num = jnp.sum(p * z, axis=-1, keepdims=True)
    den = jnp.sqrt(jnp.sum(p * p, axis=-1, keepdims=True)) * \
          jnp.sqrt(jnp.sum(z * z, axis=-1, keepdims=True))
    return num / jnp.maximum(den, _EPS_COS)   # clamp the norm PRODUCT (torch)


def _lane_cos(p, z):
    """F.cosine_similarity over the channel (sublane) axis of (C, M) -> (1, M)."""
    num = jnp.sum(p * z, axis=0, keepdims=True)
    den = jnp.sqrt(jnp.sum(p * p, axis=0, keepdims=True)) * \
          jnp.sqrt(jnp.sum(z * z, axis=0, keepdims=True))
    return num / jnp.maximum(den, _EPS_COS)


# --------------------------------------------------------------------------
# Kernel A: fused MLP branch (projection_MLP + prediction_MLP, both views,
#           cosine epilogue), one call, grid=(1,)
# --------------------------------------------------------------------------
def _mlp_path_kernel(x_ref, pw1, pg1, pb1, pw2, pg2, pb2, pw3, pg3, pb3,
                     qw1, qg1, qb1, qw2, qb2, cos12_ref, cos21_ref):
    f32 = jnp.float32
    zs, ps = [], []
    for v in range(x_ref.shape[0]):          # per view -> per-call BN stats
        x = x_ref[v].astype(jnp.bfloat16)                               # (N, Din)
        h = _bn_rows(jnp.dot(x, pw1[...], preferred_element_type=f32),
                     pg1[...], pb1[...], relu=True)
        h = _bn_rows(jnp.dot(h.astype(jnp.bfloat16), pw2[...],
                             preferred_element_type=f32),
                     pg2[...], pb2[...], relu=True)
        z = _bn_rows(jnp.dot(h.astype(jnp.bfloat16), pw3[...],
                             preferred_element_type=f32),
                     pg3[...], pb3[...], relu=False)
        u = _bn_rows(jnp.dot(z.astype(jnp.bfloat16), qw1[...],
                             preferred_element_type=f32),
                     qg1[...], qb1[...], relu=True)
        p = jnp.dot(u.astype(jnp.bfloat16), qw2[...],
                    preferred_element_type=f32) + qb2[...]
        zs.append(z)
        ps.append(p)
    cos12_ref[...] = _row_cos(ps[0], zs[1])   # cos(p1, z2)
    cos21_ref[...] = _row_cos(ps[1], zs[0])   # cos(p2, z1)


def mlp_path(params, f_a, f_b):
    p, q = params['proj'], params['pred']
    bf = lambda a: a.astype(jnp.bfloat16)
    x = jnp.stack([f_a, f_b], axis=0)                                   # (2, N, Din)
    N = f_a.shape[0]
    args = (x, bf(p['w1']), p['g1'], p['be1'], bf(p['w2']), p['g2'], p['be2'],
            bf(p['w3']), p['g3'], p['be3'],
            bf(q['w1']), q['g1'], q['be1'], bf(q['w2']), q['b2'])
    out_shape = (jax.ShapeDtypeStruct((N, 1), jnp.float32),
                 jax.ShapeDtypeStruct((N, 1), jnp.float32))
    return pl.pallas_call(
        _mlp_path_kernel,
        grid=(1,),
        in_specs=[_rep_spec(a.shape) for a in args],
        out_specs=(_rep_spec((N, 1)), _rep_spec((N, 1))),
        out_shape=out_shape,
        compiler_params=pltpu.CompilerParams(dimension_semantics=("arbitrary",)),
    )(*args)


# --------------------------------------------------------------------------
# Kernel B1: conv branch stage 1 — 1x1 convs + BN (+ReLU), one view per grid
#            step, channel-major (C, M) layout
# --------------------------------------------------------------------------
def _conv_stage1_kernel(c3_ref, w2perm_ref,
                        w1p, g1p, b1p, w2p, g2p, b2p, w1q, g1q, b1q,
                        z_ref, zf_ref, u_ref, uf_ref):
    f32 = jnp.float32
    x = c3_ref[0]                                                       # (Cin, M) bf16
    # projection_conv.layer1 (shared by the normal and shuffled calls: same
    # input -> same batch stats -> identical output).
    h1 = _bn_lanes(jnp.dot(w1p[...], x, preferred_element_type=f32),
                   g1p[...], b1p[...], relu=True)
    h1b = h1.astype(jnp.bfloat16)
    # projection_conv.conv2 + bn2: normal weight and channel-shuffled weight,
    # with SEPARATE batch statistics (two separate PyTorch calls).
    z = _bn_lanes(jnp.dot(w2p[...], h1b, preferred_element_type=f32),
                  g2p[...], b2p[...], relu=False)
    zf = _bn_lanes(jnp.dot(w2perm_ref[0], h1b, preferred_element_type=f32),
                   g2p[...], b2p[...], relu=False)
    # prediction_conv.layer1 on z and z_fake (separate calls -> separate stats)
    u = _bn_lanes(jnp.dot(w1q[...], z.astype(jnp.bfloat16),
                          preferred_element_type=f32),
                  g1q[...], b1q[...], relu=True)
    uf = _bn_lanes(jnp.dot(w1q[...], zf.astype(jnp.bfloat16),
                           preferred_element_type=f32),
                   g1q[...], b1q[...], relu=True)
    z_ref[0] = z
    zf_ref[0] = zf
    u_ref[0] = u
    uf_ref[0] = uf


# --------------------------------------------------------------------------
# Kernel B2: conv branch stage 2 — 3x3 conv as one matmul over im2col patches
#            + fused channel-cosine epilogue (lane-dense outputs)
# --------------------------------------------------------------------------
def _conv_stage2_kernel(pat_ref, patf_ref, w3perm_ref, z_ref, zf_ref, w3, b3,
                        cpos_ref, cn1_ref, cn2_ref):
    f32 = jnp.float32
    p = jnp.dot(w3[...], pat_ref[0], preferred_element_type=f32) + b3[...]
    pf = jnp.dot(w3perm_ref[0], patf_ref[0], preferred_element_type=f32) + b3[...]
    z = z_ref[0]
    zf = zf_ref[0]
    cpos_ref[0] = _lane_cos(p, z)      # cos(p1_c3,   z1_c3)
    cn1_ref[0] = _lane_cos(pf, z)      # cos(p1_fake, z1_c3)
    cn2_ref[0] = _lane_cos(p, zf)      # cos(p1_c3,   z1_fake)


def _im2col_t(u_t, N, H, W):
    """(V, C, N*H*W) channel-major activation -> (V, 9*C, N*H*W) 3x3 patches
    (padding=1).  Row index = (dy*3+dx)*C + c, matching the flattened weight."""
    V, C, M = u_t.shape
    u = u_t.reshape(V, C, N, H, W)
    up = jnp.pad(u, ((0, 0), (0, 0), (0, 0), (1, 1), (1, 1)))
    taps = [up[:, :, :, dy:dy + H, dx:dx + W].reshape(V, C, M)
            for dy in range(3) for dx in range(3)]
    return jnp.concatenate(taps, axis=1)


def conv_path(params, c3_a, c3_b, key):
    """projection_conv / prediction_conv path for both views (+ shuffled-weight
    variants) + per-position channel cosines.  Returns three (2, 1, M) arrays:
    pos, neg(shuffled predictor), neg(shuffled projector) per view."""
    cp, cq = params['cproj'], params['cpred']
    N, Hc, Wc, C = c3_a.shape
    M = N * Hc * Wc
    Hq = cq['w1'].shape[0]
    bf = lambda a: a.astype(jnp.bfloat16)

    # channel-major, lane-dense layout: (view, C, N*H*W)
    c3_t = bf(jnp.stack([c3_a.reshape(M, C).T, c3_b.reshape(M, C).T], axis=0))

    # per-view random weight shuffles (the PyTorch shuffle=True branches)
    k1, k2, k3, k4 = jax.random.split(key, 4)
    perm_a = jax.random.permutation(k1, C)     # projector: permute conv2 input chans
    perm_b = jax.random.permutation(k2, C)
    sperm_a = jax.random.permutation(k3, 9)    # predictor: permute 3x3 spatial taps
    sperm_b = jax.random.permutation(k4, 9)

    w2 = cp['w2']                                               # (Cout, Cin)
    w2perm = bf(jnp.stack([w2[:, perm_a], w2[:, perm_b]], axis=0))
    w3 = cq['w3']                                               # (3, 3, Hq, Cout)
    w3_t = bf(w3.reshape(9 * Hq, C).T)                          # (Cout, 9*Hq)
    w3r = w3.reshape(9, Hq, C)
    w3perm = bf(jnp.stack([w3r[sperm_a].reshape(9 * Hq, C).T,
                           w3r[sperm_b].reshape(9 * Hq, C).T], axis=0))

    # ---- stage 1 ----
    s1_args = (c3_t, w2perm, bf(cp['w1']), cp['g1'], cp['be1'], bf(w2),
               cp['g2'], cp['be2'], bf(cq['w1']), cq['g1'], cq['be1'])
    s1_specs = [_view_spec(c3_t.shape), _view_spec(w2perm.shape)] + \
               [_rep_spec(a.shape) for a in s1_args[2:]]
    s1_out_shape = (jax.ShapeDtypeStruct((2, C, M), jnp.float32),
                    jax.ShapeDtypeStruct((2, C, M), jnp.float32),
                    jax.ShapeDtypeStruct((2, Hq, M), jnp.float32),
                    jax.ShapeDtypeStruct((2, Hq, M), jnp.float32))
    z_t, zf_t, u_t, uf_t = pl.pallas_call(
        _conv_stage1_kernel,
        grid=(2,),
        in_specs=s1_specs,
        out_specs=(_view_spec((2, C, M)), _view_spec((2, C, M)),
                   _view_spec((2, Hq, M)), _view_spec((2, Hq, M))),
        out_shape=s1_out_shape,
        compiler_params=pltpu.CompilerParams(dimension_semantics=("parallel",)),
    )(*s1_args)

    # wrapper-side im2col keeps the 3x3 conv a single MXU matmul
    pat = bf(_im2col_t(u_t, N, Hc, Wc))
    patf = bf(_im2col_t(uf_t, N, Hc, Wc))

    # ---- stage 2 ----
    s2_args = (pat, patf, w3perm, z_t, zf_t, w3_t, cq['b3'])
    s2_specs = [_view_spec(pat.shape), _view_spec(patf.shape),
                _view_spec(w3perm.shape), _view_spec(z_t.shape),
                _view_spec(zf_t.shape), _rep_spec(w3_t.shape),
                _rep_spec(cq['b3'].shape)]
    s2_out_shape = (jax.ShapeDtypeStruct((2, 1, M), jnp.float32),
                    jax.ShapeDtypeStruct((2, 1, M), jnp.float32),
                    jax.ShapeDtypeStruct((2, 1, M), jnp.float32))
    cpos, cneg_pf, cneg_zf = pl.pallas_call(
        _conv_stage2_kernel,
        grid=(2,),
        in_specs=s2_specs,
        out_specs=(_view_spec((2, 1, M)), _view_spec((2, 1, M)),
                   _view_spec((2, 1, M))),
        out_shape=s2_out_shape,
        compiler_params=pltpu.CompilerParams(dimension_semantics=("parallel",)),
    )(*s2_args)
    return cpos, cneg_pf, cneg_zf


# --------------------------------------------------------------------------
# Parameter initialization (deterministic, synthetic)
# --------------------------------------------------------------------------
def _rand(key, shape, scale=0.1):
    return jax.random.normal(key, shape, jnp.float32) * scale


def init_params(key, d_in=32, proj_dim=32, pred_hidden=16, c3_ch=16,
                cpred_hidden=8):
    ks = jax.random.split(key, 14)
    ones = lambda s: jnp.ones(s, jnp.float32)
    zeros = lambda s: jnp.zeros(s, jnp.float32)
    p = {}
    # backbone stub projections (no resnet50 in the reference)
    p['c3_proj'] = _rand(ks[0], (3, c3_ch), 0.3)
    p['feat_proj'] = _rand(ks[1], (3, d_in), 0.3)
    # projection_MLP: Linear+BN(+ReLU) x3.  Linear biases omitted: train-mode
    # BN subtracts the batch mean, so a per-channel bias folds away exactly.
    p['proj'] = {
        'w1': _rand(ks[2], (d_in, proj_dim)), 'g1': ones((1, proj_dim)), 'be1': zeros((1, proj_dim)),
        'w2': _rand(ks[3], (proj_dim, proj_dim)), 'g2': ones((1, proj_dim)), 'be2': zeros((1, proj_dim)),
        'w3': _rand(ks[4], (proj_dim, proj_dim)), 'g3': ones((1, proj_dim)), 'be3': zeros((1, proj_dim)),
    }
    # prediction_MLP: Linear+BN+ReLU, then plain Linear (keeps its bias)
    p['pred'] = {
        'w1': _rand(ks[5], (proj_dim, pred_hidden)),
        'g1': ones((1, pred_hidden)), 'be1': zeros((1, pred_hidden)),
        'w2': _rand(ks[6], (pred_hidden, proj_dim)), 'b2': _rand(ks[7], (1, proj_dim)),
    }
    # projection_conv(c3_ch, c3_ch, c3_ch): 1x1 conv weights stored (Cout, Cin)
    p['cproj'] = {
        'w1': _rand(ks[8], (c3_ch, c3_ch)), 'g1': ones((c3_ch, 1)), 'be1': zeros((c3_ch, 1)),
        'w2': _rand(ks[9], (c3_ch, c3_ch)), 'g2': ones((c3_ch, 1)), 'be2': zeros((c3_ch, 1)),
    }
    # prediction_conv(c3_ch, cpred_hidden, c3_ch): 1x1 then 3x3 (keeps bias)
    p['cpred'] = {
        'w1': _rand(ks[10], (cpred_hidden, c3_ch)),
        'g1': ones((cpred_hidden, 1)), 'be1': zeros((cpred_hidden, 1)),
        'w3': _rand(ks[11], (3, 3, cpred_hidden, c3_ch)),
        'b3': _rand(ks[12], (c3_ch, 1)),
    }
    return p


# --------------------------------------------------------------------------
# Forward (glue around the Pallas kernels)
# --------------------------------------------------------------------------
def backbone_stub(params, x_nchw):
    # TODO(synk): resnet50 backbone not provided in the reference; replaced by
    # a deterministic pooling + fixed-projection stub producing (c3, feature).
    N, C, H, W = x_nchw.shape
    x = jnp.transpose(x_nchw, (0, 2, 3, 1))                       # NCHW -> NHWC
    pooled = x.reshape(N, H // 2, 2, W // 2, 2, C).mean(axis=(2, 4))
    c3 = jnp.einsum('nhwc,cd->nhwd', pooled, params['c3_proj'])   # (N, H/2, W/2, C3)
    feat = jnp.einsum('nc,cd->nd', x.mean(axis=(1, 2)), params['feat_proj'])
    return c3, feat


def ce_target0(pos, neg1, neg2):
    logits = jnp.stack([pos, neg1, neg2], axis=1) / 10.0
    lse = jax.scipy.special.logsumexp(logits, axis=1)
    return jnp.mean(lse - logits[:, 0])


def simsiam_forward(params, x1, x2, key):
    c3_a, f_a = backbone_stub(params, x1)
    c3_b, f_b = backbone_stub(params, x2)

    # ---- MLP branch: L = D(p1, z2)/2 + D(p2, z1)/2 ----
    cos12, cos21 = mlp_path(params, f_a, f_b)                     # (N,1), (N,1)
    L = -(jnp.mean(cos12) + jnp.mean(cos21)) / 2.0                # .mean() is identity

    # ---- conv (c3) branch + CE over [pos, neg, neg] logits ----
    cpos, cneg_pf, cneg_zf = conv_path(params, c3_a, c3_b, key)   # each (2,1,M)
    pos1, neg1, neg2 = cpos[0, 0], cneg_pf[0, 0], cneg_zf[0, 0]
    pos2, neg3, neg4 = cpos[1, 0], cneg_pf[1, 0], cneg_zf[1, 0]
    L4 = ce_target0(pos1, neg1, neg2) + ce_target0(pos2, neg3, neg4)

    losses = {'loss': L, 'L_rand': L4 / 2.0}
    stats = {'pos1': pos1.mean(), 'neg1': neg1.mean(), 'neg2': neg2.mean(),
             'pos2': pos2.mean(), 'neg3': neg3.mean(), 'neg4': neg4.mean()}
    return losses, stats


if __name__ == "__main__":
    key = jax.random.PRNGKey(0)
    kp, kx1, kx2, ksh = jax.random.split(key, 4)
    params = init_params(kp)
    x1 = jax.random.normal(kx1, (2, 3, 16, 16), jnp.float32)   # NCHW, like PyTorch
    x2 = jax.random.normal(kx2, (2, 3, 16, 16), jnp.float32)
    fwd = jax.jit(simsiam_forward)
    losses, stats = fwd(params, x1, x2, ksh)
    jax.block_until_ready((losses, stats))
    print("KERNEL_OK")
</pallas_src>

<mosaic_0001>
module attributes {stable_mosaic.version = 11 : i64} {
  func.func @_conv_stage1_kernel(%arg0: i32, %arg1: memref<1x16x128xbf16, #tpu.memory_space<vmem>>, %arg2: memref<1x16x16xbf16, #tpu.memory_space<vmem>>, %arg3: memref<16x16xbf16, #tpu.memory_space<vmem>>, %arg4: memref<16x1xf32, #tpu.memory_space<vmem>>, %arg5: memref<16x1xf32, #tpu.memory_space<vmem>>, %arg6: memref<16x16xbf16, #tpu.memory_space<vmem>>, %arg7: memref<16x1xf32, #tpu.memory_space<vmem>>, %arg8: memref<16x1xf32, #tpu.memory_space<vmem>>, %arg9: memref<8x16xbf16, #tpu.memory_space<vmem>>, %arg10: memref<8x1xf32, #tpu.memory_space<vmem>>, %arg11: memref<8x1xf32, #tpu.memory_space<vmem>>, %arg12: memref<1x16x128xf32, #tpu.memory_space<vmem>>, %arg13: memref<1x16x128xf32, #tpu.memory_space<vmem>>, %arg14: memref<1x8x128xf32, #tpu.memory_space<vmem>>, %arg15: memref<1x8x128xf32, #tpu.memory_space<vmem>>) attributes {dimension_semantics = [#tpu.dimension_semantics<parallel>], iteration_bounds = array<i64: 2>, scalar_prefetch = 0 : i64, scratch_operands = 0 : i64, tpu.core_type = #tpu.core_type<tc>, window_params = [{transform_indices = @transform_0, window_bounds = array<i64: 1, 16, 128>}, {transform_indices = @transform_1, window_bounds = array<i64: 1, 16, 16>}, {pipeline_mode = #tpu.pipeline_mode<synchronous>, transform_indices = @transform_2, window_bounds = array<i64: 16, 16>}, {pipeline_mode = #tpu.pipeline_mode<synchronous>, transform_indices = @transform_3, window_bounds = array<i64: 16, 1>}, {pipeline_mode = #tpu.pipeline_mode<synchronous>, transform_indices = @transform_4, window_bounds = array<i64: 16, 1>}, {pipeline_mode = #tpu.pipeline_mode<synchronous>, transform_indices = @transform_5, window_bounds = array<i64: 16, 16>}, {pipeline_mode = #tpu.pipeline_mode<synchronous>, transform_indices = @transform_6, window_bounds = array<i64: 16, 1>}, {pipeline_mode = #tpu.pipeline_mode<synchronous>, transform_indices = @transform_7, window_bounds = array<i64: 16, 1>}, {pipeline_mode = #tpu.pipeline_mode<synchronous>, transform_indices = @transform_8, window_bounds = array<i64: 8, 16>}, {pipeline_mode = #tpu.pipeline_mode<synchronous>, transform_indices = @transform_9, window_bounds = array<i64: 8, 1>}, {pipeline_mode = #tpu.pipeline_mode<synchronous>, transform_indices = @transform_10, window_bounds = array<i64: 8, 1>}, {transform_indices = @transform_11, window_bounds = array<i64: 1, 16, 128>}, {transform_indices = @transform_12, window_bounds = array<i64: 1, 16, 128>}, {transform_indices = @transform_13, window_bounds = array<i64: 1, 8, 128>}, {transform_indices = @transform_14, window_bounds = array<i64: 1, 8, 128>}]} {
    %c0 = arith.constant 0 : index
    %c0_0 = arith.constant 0 : index
    %c0_1 = arith.constant 0 : index
    %0 = vector.load %arg1[%c0, %c0_0, %c0_1] : memref<1x16x128xbf16, #tpu.memory_space<vmem>>, vector<1x16x128xbf16>
    %1 = vector.shape_cast %0 : vector<1x16x128xbf16> to vector<16x128xbf16>
    %c0_2 = arith.constant 0 : index
    %c0_3 = arith.constant 0 : index
    %2 = vector.load %arg3[%c0_2, %c0_3] : memref<16x16xbf16, #tpu.memory_space<vmem>>, vector<16x16xbf16>
    %cst = arith.constant dense<0.000000e+00> : vector<16x128xf32>
    %3 = tpu.matmul %2, %1, %cst {dimension_numbers = #tpu.dot_dimension_numbers<[1], [0], [0], [1], [0, 0, 1, 1], [], []>} : vector<16x16xbf16>, vector<16x128xbf16>, vector<16x128xf32> -> vector<16x128xf32>
    %c0_4 = arith.constant 0 : index
    %c0_5 = arith.constant 0 : index
    %4 = vector.load %arg4[%c0_4, %c0_5] : memref<16x1xf32, #tpu.memory_space<vmem>>, vector<16x1xf32>
    %c0_6 = arith.constant 0 : index
    %c0_7 = arith.constant 0 : index
    %5 = vector.load %arg5[%c0_6, %c0_7] : memref<16x1xf32, #tpu.memory_space<vmem>>, vector<16x1xf32>
    %cst_8 = arith.constant dense<0.000000e+00> : vector<16xf32>
    %6 = vector.multi_reduction <add>, %3, %cst_8 [1] : vector<16x128xf32> to vector<16xf32>
    %7 = vector.shape_cast %6 : vector<16xf32> to vector<16x1xf32>
    %8 = arith.mulf %3, %3 : vector<16x128xf32>
    %cst_9 = arith.constant dense<0.000000e+00> : vector<16xf32>
    %9 = vector.multi_reduction <add>, %8, %cst_9 [1] : vector<16x128xf32> to vector<16xf32>
    %10 = vector.shape_cast %9 : vector<16xf32> to vector<16x1xf32>
    %cst_10 = arith.constant 7.812500e-03 : f32
    %11 = vector.broadcast %cst_10 : f32 to vector<16x1xf32>
    %12 = arith.mulf %7, %11 : vector<16x1xf32>
    %cst_11 = arith.constant 7.812500e-03 : f32
    %13 = vector.broadcast %cst_11 : f32 to vector<16x1xf32>
    %14 = arith.mulf %10, %13 : vector<16x1xf32>
    %15 = arith.mulf %12, %12 : vector<16x1xf32>
    %16 = arith.subf %14, %15 : vector<16x1xf32>
    %cst_12 = arith.constant 0.000000e+00 : f32
    %17 = vector.broadcast %cst_12 : f32 to vector<16x1xf32>
    %18 = arith.maximumf %16, %17 : vector<16x1xf32>
    %19 = vector.broadcast %12 : vector<16x1xf32> to vector<16x128xf32>
    %20 = arith.subf %3, %19 : vector<16x128xf32>
    %cst_13 = arith.constant 9.99999974E-6 : f32
    %21 = vector.broadcast %cst_13 : f32 to vector<16x1xf32>
    %22 = arith.addf %18, %21 : vector<16x1xf32>
    %23 = math.rsqrt %22 : vector<16x1xf32>
    %24 = vector.broadcast %23 : vector<16x1xf32> to vector<16x128xf32>
    %25 = arith.mulf %20, %24 : vector<16x128xf32>
    %26 = vector.broadcast %4 : vector<16x1xf32> to vector<16x128xf32>
    %27 = arith.mulf %25, %26 : vector<16x128xf32>
    %28 = vector.broadcast %5 : vector<16x1xf32> to vector<16x128xf32>
    %29 = arith.addf %27, %28 : vector<16x128xf32>
    %cst_14 = arith.constant 0.000000e+00 : f32
    %30 = vector.broadcast %cst_14 : f32 to vector<16x128xf32>
    %31 = arith.maximumf %29, %30 : vector<16x128xf32>
    %32 = arith.truncf %31 : vector<16x128xf32> to vector<16x128xbf16>
    %c0_15 = arith.constant 0 : index
    %c0_16 = arith.constant 0 : index
    %33 = vector.load %arg6[%c0_15, %c0_16] : memref<16x16xbf16, #tpu.memory_space<vmem>>, vector<16x16xbf16>
    %cst_17 = arith.constant dense<0.000000e+00> : vector<16x128xf32>
    %34 = tpu.matmul %33, %32, %cst_17 {dimension_numbers = #tpu.dot_dimension_numbers<[1], [0], [0], [1], [0, 0, 1, 1], [], []>} : vector<16x16xbf16>, vector<16x128xbf16>, vector<16x128xf32> -> vector<16x128xf32>
    %c0_18 = arith.constant 0 : index
    %c0_19 = arith.constant 0 : index
    %35 = vector.load %arg7[%c0_18, %c0_19] : memref<16x1xf32, #tpu.memory_space<vmem>>, vector<16x1xf32>
    %c0_20 = arith.constant 0 : index
    %c0_21 = arith.constant 0 : index
    %36 = vector.load %arg8[%c0_20, %c0_21] : memref<16x1xf32, #tpu.memory_space<vmem>>, vector<16x1xf32>
    %cst_22 = arith.constant dense<0.000000e+00> : vector<16xf32>
    %37 = vector.multi_reduction <add>, %34, %cst_22 [1] : vector<16x128xf32> to vector<16xf32>
    %38 = vector.shape_cast %37 : vector<16xf32> to vector<16x1xf32>
    %39 = arith.mulf %34, %34 : vector<16x128xf32>
    %cst_23 = arith.constant dense<0.000000e+00> : vector<16xf32>
    %40 = vector.multi_reduction <add>, %39, %cst_23 [1] : vector<16x128xf32> to vector<16xf32>
    %41 = vector.shape_cast %40 : vector<16xf32> to vector<16x1xf32>
    %cst_24 = arith.constant 7.812500e-03 : f32
    %42 = vector.broadcast %cst_24 : f32 to vector<16x1xf32>
    %43 = arith.mulf %38, %42 : vector<16x1xf32>
    %cst_25 = arith.constant 7.812500e-03 : f32
    %44 = vector.broadcast %cst_25 : f32 to vector<16x1xf32>
    %45 = arith.mulf %41, %44 : vector<16x1xf32>
    %46 = arith.mulf %43, %43 : vector<16x1xf32>
    %47 = arith.subf %45, %46 : vector<16x1xf32>
    %cst_26 = arith.constant 0.000000e+00 : f32
    %48 = vector.broadcast %cst_26 : f32 to vector<16x1xf32>
    %49 = arith.maximumf %47, %48 : vector<16x1xf32>
    %50 = vector.broadcast %43 : vector<16x1xf32> to vector<16x128xf32>
    %51 = arith.subf %34, %50 : vector<16x128xf32>
    %cst_27 = arith.constant 9.99999974E-6 : f32
    %52 = vector.broadcast %cst_27 : f32 to vector<16x1xf32>
    %53 = arith.addf %49, %52 : vector<16x1xf32>
    %54 = math.rsqrt %53 : vector<16x1xf32>
    %55 = vector.broadcast %54 : vector<16x1xf32> to vector<16x128xf32>
    %56 = arith.mulf %51, %55 : vector<16x128xf32>
    %57 = vector.broadcast %35 : vector<16x1xf32> to vector<16x128xf32>
    %58 = arith.mulf %56, %57 : vector<16x128xf32>
    %59 = vector.broadcast %36 : vector<16x1xf32> to vector<16x128xf32>
    %60 = arith.addf %58, %59 : vector<16x128xf32>
    %c0_28 = arith.constant 0 : index
    %c0_29 = arith.constant 0 : index
    %c0_30 = arith.constant 0 : index
    %61 = vector.load %arg2[%c0_28, %c0_29, %c0_30] : memref<1x16x16xbf16, #tpu.memory_space<vmem>>, vector<1x16x16xbf16>
    %62 = vector.shape_cast %61 : vector<1x16x16xbf16> to vector<16x16xbf16>
    %cst_31 = arith.constant dense<0.000000e+00> : vector<16x128xf32>
    %63 = tpu.matmul %62, %32, %cst_31 {dimension_numbers = #tpu.dot_dimension_numbers<[1], [0], [0], [1], [0, 0, 1, 1], [], []>} : vector<16x16xbf16>, vector<16x128xbf16>, vector<16x128xf32> -> vector<16x128xf32>
    %c0_32 = arith.constant 0 : index
    %c0_33 = arith.constant 0 : index
    %64 = vector.load %arg7[%c0_32, %c0_33] : memref<16x1xf32, #tpu.memory_space<vmem>>, vector<16x1xf32>
    %c0_34 = arith.constant 0 : index
    %c0_35 = arith.constant 0 : index
    %65 = vector.load %arg8[%c0_34, %c0_35] : memref<16x1xf32, #tpu.memory_space<vmem>>, vector<16x1xf32>
    %cst_36 = arith.constant dense<0.000000e+00> : vector<16xf32>
    %66 = vector.multi_reduction <add>, %63, %cst_36 [1] : vector<16x128xf32> to vector<16xf32>
    %67 = vector.shape_cast %66 : vector<16xf32> to vector<16x1xf32>
    %68 = arith.mulf %63, %63 : vector<16x128xf32>
    %cst_37 = arith.constant dense<0.000000e+00> : vector<16xf32>
    %69 = vector.multi_reduction <add>, %68, %cst_37 [1] : vector<16x128xf32> to vector<16xf32>
    %70 = vector.shape_cast %69 : vector<16xf32> to vector<16x1xf32>
    %cst_38 = arith.constant 7.812500e-03 : f32
    %71 = vector.broadcast %cst_38 : f32 to vector<16x1xf32>
    %72 = arith.mulf %67, %71 : vector<16x1xf32>
    %cst_39 = arith.constant 7.812500e-03 : f32
    %73 = vector.broadcast %cst_39 : f32 to vector<16x1xf32>
    %74 = arith.mulf %70, %73 : vector<16x1xf32>
    %75 = arith.mulf %72, %72 : vector<16x1xf32>
    %76 = arith.subf %74, %75 : vector<16x1xf32>
    %cst_40 = arith.constant 0.000000e+00 : f32
    %77 = vector.broadcast %cst_40 : f32 to vector<16x1xf32>
    %78 = arith.maximumf %76, %77 : vector<16x1xf32>
    %79 = vector.broadcast %72 : vector<16x1xf32> to vector<16x128xf32>
    %80 = arith.subf %63, %79 : vector<16x128xf32>
    %cst_41 = arith.constant 9.99999974E-6 : f32
    %81 = vector.broadcast %cst_41 : f32 to vector<16x1xf32>
    %82 = arith.addf %78, %81 : vector<16x1xf32>
    %83 = math.rsqrt %82 : vector<16x1xf32>
    %84 = vector.broadcast %83 : vector<16x1xf32> to vector<16x128xf32>
    %85 = arith.mulf %80, %84 : vector<16x128xf32>
    %86 = vector.broadcast %64 : vector<16x1xf32> to vector<16x128xf32>
    %87 = arith.mulf %85, %86 : vector<16x128xf32>
    %88 = vector.broadcast %65 : vector<16x1xf32> to vector<16x128xf32>
    %89 = arith.addf %87, %88 : vector<16x128xf32>
    %c0_42 = arith.constant 0 : index
    %c0_43 = arith.constant 0 : index
    %90 = vector.load %arg9[%c0_42, %c0_43] : memref<8x16xbf16, #tpu.memory_space<vmem>>, vector<8x16xbf16>
    %91 = arith.truncf %60 : vector<16x128xf32> to vector<16x128xbf16>
    %cst_44 = arith.constant dense<0.000000e+00> : vector<8x128xf32>
    %92 = tpu.matmul %90, %91, %cst_44 {dimension_numbers = #tpu.dot_dimension_numbers<[1], [0], [0], [1], [0, 0, 1, 1], [], []>} : vector<8x16xbf16>, vector<16x128xbf16>, vector<8x128xf32> -> vector<8x128xf32>
    %c0_45 = arith.constant 0 : index
    %c0_46 = arith.constant 0 : index
    %93 = vector.load %arg10[%c0_45, %c0_46] : memref<8x1xf32, #tpu.memory_space<vmem>>, vector<8x1xf32>
    %c0_47 = arith.constant 0 : index
    %c0_48 = arith.constant 0 : index
    %94 = vector.load %arg11[%c0_47, %c0_48] : memref<8x1xf32, #tpu.memory_space<vmem>>, vector<8x1xf32>
    %cst_49 = arith.constant dense<0.000000e+00> : vector<8xf32>
    %95 = vector.multi_reduction <add>, %92, %cst_49 [1] : vector<8x128xf32> to vector<8xf32>
    %96 = vector.shape_cast %95 : vector<8xf32> to vector<8x1xf32>
    %97 = arith.mulf %92, %92 : vector<8x128xf32>
    %cst_50 = arith.constant dense<0.000000e+00> : vector<8xf32>
    %98 = vector.multi_reduction <add>, %97, %cst_50 [1] : vector<8x128xf32> to vector<8xf32>
    %99 = vector.shape_cast %98 : vector<8xf32> to vector<8x1xf32>
    %cst_51 = arith.constant 7.812500e-03 : f32
    %100 = vector.broadcast %cst_51 : f32 to vector<8x1xf32>
    %101 = arith.mulf %96, %100 : vector<8x1xf32>
    %cst_52 = arith.constant 7.812500e-03 : f32
    %102 = vector.broadcast %cst_52 : f32 to vector<8x1xf32>
    %103 = arith.mulf %99, %102 : vector<8x1xf32>
    %104 = arith.mulf %101, %101 : vector<8x1xf32>
    %105 = arith.subf %103, %104 : vector<8x1xf32>
    %cst_53 = arith.constant 0.000000e+00 : f32
    %106 = vector.broadcast %cst_53 : f32 to vector<8x1xf32>
    %107 = arith.maximumf %105, %106 : vector<8x1xf32>
    %108 = vector.broadcast %101 : vector<8x1xf32> to vector<8x128xf32>
    %109 = arith.subf %92, %108 : vector<8x128xf32>
    %cst_54 = arith.constant 9.99999974E-6 : f32
    %110 = vector.broadcast %cst_54 : f32 to vector<8x1xf32>
    %111 = arith.addf %107, %110 : vector<8x1xf32>
    %112 = math.rsqrt %111 : vector<8x1xf32>
    %113 = vector.broadcast %112 : vector<8x1xf32> to vector<8x128xf32>
    %114 = arith.mulf %109, %113 : vector<8x128xf32>
    %115 = vector.broadcast %93 : vector<8x1xf32> to vector<8x128xf32>
    %116 = arith.mulf %114, %115 : vector<8x128xf32>
    %117 = vector.broadcast %94 : vector<8x1xf32> to vector<8x128xf32>
    %118 = arith.addf %116, %117 : vector<8x128xf32>
    %cst_55 = arith.constant 0.000000e+00 : f32
    %119 = vector.broadcast %cst_55 : f32 to vector<8x128xf32>
    %120 = arith.maximumf %118, %119 : vector<8x128xf32>
    %c0_56 = arith.constant 0 : index
    %c0_57 = arith.constant 0 : index
    %121 = vector.load %arg9[%c0_56, %c0_57] : memref<8x16xbf16, #tpu.memory_space<vmem>>, vector<8x16xbf16>
    %122 = arith.truncf %89 : vector<16x128xf32> to vector<16x128xbf16>
    %cst_58 = arith.constant dense<0.000000e+00> : vector<8x128xf32>
    %123 = tpu.matmul %121, %122, %cst_58 {dimension_numbers = #tpu.dot_dimension_numbers<[1], [0], [0], [1], [0, 0, 1, 1], [], []>} : vector<8x16xbf16>, vector<16x128xbf16>, vector<8x128xf32> -> vector<8x128xf32>
    %c0_59 = arith.constant 0 : index
    %c0_60 = arith.constant 0 : index
    %124 = vector.load %arg10[%c0_59, %c0_60] : memref<8x1xf32, #tpu.memory_space<vmem>>, vector<8x1xf32>
    %c0_61 = arith.constant 0 : index
    %c0_62 = arith.constant 0 : index
    %125 = vector.load %arg11[%c0_61, %c0_62] : memref<8x1xf32, #tpu.memory_space<vmem>>, vector<8x1xf32>
    %cst_63 = arith.constant dense<0.000000e+00> : vector<8xf32>
    %126 = vector.multi_reduction <add>, %123, %cst_63 [1] : vector<8x128xf32> to vector<8xf32>
    %127 = vector.shape_cast %126 : vector<8xf32> to vector<8x1xf32>
    %128 = arith.mulf %123, %123 : vector<8x128xf32>
    %cst_64 = arith.constant dense<0.000000e+00> : vector<8xf32>
    %129 = vector.multi_reduction <add>, %128, %cst_64 [1] : vector<8x128xf32> to vector<8xf32>
    %130 = vector.shape_cast %129 : vector<8xf32> to vector<8x1xf32>
    %cst_65 = arith.constant 7.812500e-03 : f32
    %131 = vector.broadcast %cst_65 : f32 to vector<8x1xf32>
    %132 = arith.mulf %127, %131 : vector<8x1xf32>
    %cst_66 = arith.constant 7.812500e-03 : f32
    %133 = vector.broadcast %cst_66 : f32 to vector<8x1xf32>
    %134 = arith.mulf %130, %133 : vector<8x1xf32>
    %135 = arith.mulf %132, %132 : vector<8x1xf32>
    %136 = arith.subf %134, %135 : vector<8x1xf32>
    %cst_67 = arith.constant 0.000000e+00 : f32
    %137 = vector.broadcast %cst_67 : f32 to vector<8x1xf32>
    %138 = arith.maximumf %136, %137 : vector<8x1xf32>
    %139 = vector.broadcast %132 : vector<8x1xf32> to vector<8x128xf32>
    %140 = arith.subf %123, %139 : vector<8x128xf32>
    %cst_68 = arith.constant 9.99999974E-6 : f32
    %141 = vector.broadcast %cst_68 : f32 to vector<8x1xf32>
    %142 = arith.addf %138, %141 : vector<8x1xf32>
    %143 = math.rsqrt %142 : vector<8x1xf32>
    %144 = vector.broadcast %143 : vector<8x1xf32> to vector<8x128xf32>
    %145 = arith.mulf %140, %144 : vector<8x128xf32>
    %146 = vector.broadcast %124 : vector<8x1xf32> to vector<8x128xf32>
    %147 = arith.mulf %145, %146 : vector<8x128xf32>
    %148 = vector.broadcast %125 : vector<8x1xf32> to vector<8x128xf32>
    %149 = arith.addf %147, %148 : vector<8x128xf32>
    %cst_69 = arith.constant 0.000000e+00 : f32
    %150 = vector.broadcast %cst_69 : f32 to vector<8x128xf32>
    %151 = arith.maximumf %149, %150 : vector<8x128xf32>
    %c0_70 = arith.constant 0 : index
    %c0_71 = arith.constant 0 : index
    %c0_72 = arith.constant 0 : index
    %152 = vector.load %arg12[%c0_70, %c0_71, %c0_72] : memref<1x16x128xf32, #tpu.memory_space<vmem>>, vector<1x16x128xf32>
    %153 = vector.shape_cast %152 : vector<1x16x128xf32> to vector<16x128xf32>
    %154 = vector.shape_cast %60 : vector<16x128xf32> to vector<1x16x128xf32>
    tpu.vector_store %arg12[%c0_70, %c0_71, %c0_72], %154 {strides = array<i32>} : memref<1x16x128xf32, #tpu.memory_space<vmem>>, vector<1x16x128xf32>,
    %c0_73 = arith.constant 0 : index
    %c0_74 = arith.constant 0 : index
    %c0_75 = arith.constant 0 : index
    %155 = vector.load %arg13[%c0_73, %c0_74, %c0_75] : memref<1x16x128xf32, #tpu.memory_space<vmem>>, vector<1x16x128xf32>
    %156 = vector.shape_cast %155 : vector<1x16x128xf32> to vector<16x128xf32>
    %157 = vector.shape_cast %89 : vector<16x128xf32> to vector<1x16x128xf32>
    tpu.vector_store %arg13[%c0_73, %c0_74, %c0_75], %157 {strides = array<i32>} : memref<1x16x128xf32, #tpu.memory_space<vmem>>, vector<1x16x128xf32>,
    %c0_76 = arith.constant 0 : index
    %c0_77 = arith.constant 0 : index
    %c0_78 = arith.constant 0 : index
    %158 = vector.load %arg14[%c0_76, %c0_77, %c0_78] : memref<1x8x128xf32, #tpu.memory_space<vmem>>, vector<1x8x128xf32>
    %159 = vector.shape_cast %158 : vector<1x8x128xf32> to vector<8x128xf32>
    %160 = vector.shape_cast %120 : vector<8x128xf32> to vector<1x8x128xf32>
    tpu.vector_store %arg14[%c0_76, %c0_77, %c0_78], %160 {strides = array<i32>} : memref<1x8x128xf32, #tpu.memory_space<vmem>>, vector<1x8x128xf32>,
    %c0_79 = arith.constant 0 : index
    %c0_80 = arith.constant 0 : index
    %c0_81 = arith.constant 0 : index
    %161 = vector.load %arg15[%c0_79, %c0_80, %c0_81] : memref<1x8x128xf32, #tpu.memory_space<vmem>>, vector<1x8x128xf32>
    %162 = vector.shape_cast %161 : vector<1x8x128xf32> to vector<8x128xf32>
    %163 = vector.shape_cast %151 : vector<8x128xf32> to vector<1x8x128xf32>
    tpu.vector_store %arg15[%c0_79, %c0_80, %c0_81], %163 {strides = array<i32>} : memref<1x8x128xf32, #tpu.memory_space<vmem>>, vector<1x8x128xf32>,
    return
  }
  func.func @transform_0(%arg0: i32) -> (i32, i32, i32) {
    %c0_i32 = arith.constant 0 : i32
    %c0_i32_0 = arith.constant 0 : i32
    %c0_i32_1 = arith.constant 0 : i32
    return %arg0, %c0_i32, %c0_i32_0 : i32, i32, i32
  }
  func.func @transform_1(%arg0: i32) -> (i32, i32, i32) {
    %c0_i32 = arith.constant 0 : i32
    %c0_i32_0 = arith.constant 0 : i32
    %c0_i32_1 = arith.constant 0 : i32
    return %arg0, %c0_i32, %c0_i32_0 : i32, i32, i32
  }
  func.func @transform_2(%arg0: i32) -> (i32, i32) {
    %c0_i32 = arith.constant 0 : i32
    %c0_i32_0 = arith.constant 0 : i32
    %c0_i32_1 = arith.constant 0 : i32
    return %c0_i32, %c0_i32_0 : i32, i32
  }
  func.func @transform_3(%arg0: i32) -> (i32, i32) {
    %c0_i32 = arith.constant 0 : i32
    %c0_i32_0 = arith.constant 0 : i32
    %c0_i32_1 = arith.constant 0 : i32
    return %c0_i32, %c0_i32_0 : i32, i32
  }
  func.func @transform_4(%arg0: i32) -> (i32, i32) {
    %c0_i32 = arith.constant 0 : i32
    %c0_i32_0 = arith.constant 0 : i32
    %c0_i32_1 = arith.constant 0 : i32
    return %c0_i32, %c0_i32_0 : i32, i32
  }
  func.func @transform_5(%arg0: i32) -> (i32, i32) {
    %c0_i32 = arith.constant 0 : i32
    %c0_i32_0 = arith.constant 0 : i32
    %c0_i32_1 = arith.constant 0 : i32
    return %c0_i32, %c0_i32_0 : i32, i32
  }
  func.func @transform_6(%arg0: i32) -> (i32, i32) {
    %c0_i32 = arith.constant 0 : i32
    %c0_i32_0 = arith.constant 0 : i32
    %c0_i32_1 = arith.constant 0 : i32
    return %c0_i32, %c0_i32_0 : i32, i32
  }
  func.func @transform_7(%arg0: i32) -> (i32, i32) {
    %c0_i32 = arith.constant 0 : i32
    %c0_i32_0 = arith.constant 0 : i32
    %c0_i32_1 = arith.constant 0 : i32
    return %c0_i32, %c0_i32_0 : i32, i32
  }
  func.func @transform_8(%arg0: i32) -> (i32, i32) {
    %c0_i32 = arith.constant 0 : i32
    %c0_i32_0 = arith.constant 0 : i32
    %c0_i32_1 = arith.constant 0 : i32
    return %c0_i32, %c0_i32_0 : i32, i32
  }
  func.func @transform_9(%arg0: i32) -> (i32, i32) {
    %c0_i32 = arith.constant 0 : i32
    %c0_i32_0 = arith.constant 0 : i32
    %c0_i32_1 = arith.constant 0 : i32
    return %c0_i32, %c0_i32_0 : i32, i32
  }
  func.func @transform_10(%arg0: i32) -> (i32, i32) {
    %c0_i32 = arith.constant 0 : i32
    %c0_i32_0 = arith.constant 0 : i32
    %c0_i32_1 = arith.constant 0 : i32
    return %c0_i32, %c0_i32_0 : i32, i32
  }
  func.func @transform_11(%arg0: i32) -> (i32, i32, i32) {
    %c0_i32 = arith.constant 0 : i32
    %c0_i32_0 = arith.constant 0 : i32
    %c0_i32_1 = arith.constant 0 : i32
    return %arg0, %c0_i32, %c0_i32_0 : i32, i32, i32
  }
  func.func @transform_12(%arg0: i32) -> (i32, i32, i32) {
    %c0_i32 = arith.constant 0 : i32
    %c0_i32_0 = arith.constant 0 : i32
    %c0_i32_1 = arith.constant 0 : i32
    return %arg0, %c0_i32, %c0_i32_0 : i32, i32, i32
  }
  func.func @transform_13(%arg0: i32) -> (i32, i32, i32) {
    %c0_i32 = arith.constant 0 : i32
    %c0_i32_0 = arith.constant 0 : i32
    %c0_i32_1 = arith.constant 0 : i32
    return %arg0, %c0_i32, %c0_i32_0 : i32, i32, i32
  }
  func.func @transform_14(%arg0: i32) -> (i32, i32, i32) {
    %c0_i32 = arith.constant 0 : i32
    %c0_i32_0 = arith.constant 0 : i32
    %c0_i32_1 = arith.constant 0 : i32
    return %arg0, %c0_i32, %c0_i32_0 : i32, i32, i32
  }
}

module attributes {stable_mosaic.version = 11 : i64} {
  func.func @_conv_stage2_kernel(%arg0: i32, %arg1: memref<1x72x128xbf16, #tpu.memory_space<vmem>>, %arg2: memref<1x72x128xbf16, #tpu.memory_space<vmem>>, %arg3: memref<1x16x72xbf16, #tpu.memory_space<vmem>>, %arg4: memref<1x16x128xf32, #tpu.memory_space<vmem>>, %arg5: memref<1x16x128xf32, #tpu.memory_space<vmem>>, %arg6: memref<16x72xbf16, #tpu.memory_space<vmem>>, %arg7: memref<16x1xf32, #tpu.memory_space<vmem>>, %arg8: memref<1x1x128xf32, #tpu.memory_space<vmem>>, %arg9: memref<1x1x128xf32, #tpu.memory_space<vmem>>, %arg10: memref<1x1x128xf32, #tpu.memory_space<vmem>>) attributes {dimension_semantics = [#tpu.dimension_semantics<parallel>], iteration_bounds = array<i64: 2>, scalar_prefetch = 0 : i64, scratch_operands = 0 : i64, tpu.core_type = #tpu.core_type<tc>, window_params = [{transform_indices = @transform_0, window_bounds = array<i64: 1, 72, 128>}, {transform_indices = @transform_1, window_bounds = array<i64: 1, 72, 128>}, {transform_indices = @transform_2, window_bounds = array<i64: 1, 16, 72>}, {transform_indices = @transform_3, window_bounds = array<i64: 1, 16, 128>}, {transform_indices = @transform_4, window_bounds = array<i64: 1, 16, 128>}, {pipeline_mode = #tpu.pipeline_mode<synchronous>, transform_indices = @transform_5, window_bounds = array<i64: 16, 72>}, {pipeline_mode = #tpu.pipeline_mode<synchronous>, transform_indices = @transform_6, window_bounds = array<i64: 16, 1>}, {transform_indices = @transform_7, window_bounds = array<i64: 1, 1, 128>}, {transform_indices = @transform_8, window_bounds = array<i64: 1, 1, 128>}, {transform_indices = @transform_9, window_bounds = array<i64: 1, 1, 128>}]} {
    %c0 = arith.constant 0 : index
    %c0_0 = arith.constant 0 : index
    %0 = vector.load %arg6[%c0, %c0_0] : memref<16x72xbf16, #tpu.memory_space<vmem>>, vector<16x72xbf16>
    %c0_1 = arith.constant 0 : index
    %c0_2 = arith.constant 0 : index
    %c0_3 = arith.constant 0 : index
    %1 = vector.load %arg1[%c0_1, %c0_2, %c0_3] : memref<1x72x128xbf16, #tpu.memory_space<vmem>>, vector<1x72x128xbf16>
    %2 = vector.shape_cast %1 : vector<1x72x128xbf16> to vector<72x128xbf16>
    %cst = arith.constant dense<0.000000e+00> : vector<16x128xf32>
    %3 = tpu.matmul %0, %2, %cst {dimension_numbers = #tpu.dot_dimension_numbers<[1], [0], [0], [1], [0, 0, 1, 1], [], []>} : vector<16x72xbf16>, vector<72x128xbf16>, vector<16x128xf32> -> vector<16x128xf32>
    %c0_4 = arith.constant 0 : index
    %c0_5 = arith.constant 0 : index
    %4 = vector.load %arg7[%c0_4, %c0_5] : memref<16x1xf32, #tpu.memory_space<vmem>>, vector<16x1xf32>
    %5 = vector.broadcast %4 : vector<16x1xf32> to vector<16x128xf32>
    %6 = arith.addf %3, %5 : vector<16x128xf32>
    %c0_6 = arith.constant 0 : index
    %c0_7 = arith.constant 0 : index
    %c0_8 = arith.constant 0 : index
    %7 = vector.load %arg3[%c0_6, %c0_7, %c0_8] : memref<1x16x72xbf16, #tpu.memory_space<vmem>>, vector<1x16x72xbf16>
    %8 = vector.shape_cast %7 : vector<1x16x72xbf16> to vector<16x72xbf16>
    %c0_9 = arith.constant 0 : index
    %c0_10 = arith.constant 0 : index
    %c0_11 = arith.constant 0 : index
    %9 = vector.load %arg2[%c0_9, %c0_10, %c0_11] : memref<1x72x128xbf16, #tpu.memory_space<vmem>>, vector<1x72x128xbf16>
    %10 = vector.shape_cast %9 : vector<1x72x128xbf16> to vector<72x128xbf16>
    %cst_12 = arith.constant dense<0.000000e+00> : vector<16x128xf32>
    %11 = tpu.matmul %8, %10, %cst_12 {dimension_numbers = #tpu.dot_dimension_numbers<[1], [0], [0], [1], [0, 0, 1, 1], [], []>} : vector<16x72xbf16>, vector<72x128xbf16>, vector<16x128xf32> -> vector<16x128xf32>
    %c0_13 = arith.constant 0 : index
    %c0_14 = arith.constant 0 : index
    %12 = vector.load %arg7[%c0_13, %c0_14] : memref<16x1xf32, #tpu.memory_space<vmem>>, vector<16x1xf32>
    %13 = vector.broadcast %12 : vector<16x1xf32> to vector<16x128xf32>
    %14 = arith.addf %11, %13 : vector<16x128xf32>
    %c0_15 = arith.constant 0 : index
    %c0_16 = arith.constant 0 : index
    %c0_17 = arith.constant 0 : index
    %15 = vector.load %arg4[%c0_15, %c0_16, %c0_17] : memref<1x16x128xf32, #tpu.memory_space<vmem>>, vector<1x16x128xf32>
    %16 = vector.shape_cast %15 : vector<1x16x128xf32> to vector<16x128xf32>
    %c0_18 = arith.constant 0 : index
    %c0_19 = arith.constant 0 : index
    %c0_20 = arith.constant 0 : index
    %17 = vector.load %arg5[%c0_18, %c0_19, %c0_20] : memref<1x16x128xf32, #tpu.memory_space<vmem>>, vector<1x16x128xf32>
    %18 = vector.shape_cast %17 : vector<1x16x128xf32> to vector<16x128xf32>
    %19 = arith.mulf %6, %16 : vector<16x128xf32>
    %cst_21 = arith.constant dense<0.000000e+00> : vector<128xf32>
    %20 = vector.multi_reduction <add>, %19, %cst_21 [0] : vector<16x128xf32> to vector<128xf32>
    %21 = vector.shape_cast %20 : vector<128xf32> to vector<1x128xf32>
    %22 = arith.mulf %6, %6 : vector<16x128xf32>
    %cst_22 = arith.constant dense<0.000000e+00> : vector<128xf32>
    %23 = vector.multi_reduction <add>, %22, %cst_22 [0] : vector<16x128xf32> to vector<128xf32>
    %24 = vector.shape_cast %23 : vector<128xf32> to vector<1x128xf32>
    %25 = math.sqrt %24 : vector<1x128xf32>
    %26 = arith.mulf %16, %16 : vector<16x128xf32>
    %cst_23 = arith.constant dense<0.000000e+00> : vector<128xf32>
    %27 = vector.multi_reduction <add>, %26, %cst_23 [0] : vector<16x128xf32> to vector<128xf32>
    %28 = vector.shape_cast %27 : vector<128xf32> to vector<1x128xf32>
    %29 = math.sqrt %28 : vector<1x128xf32>
    %30 = arith.mulf %25, %29 : vector<1x128xf32>
    %cst_24 = arith.constant 9.99999993E-9 : f32
    %31 = vector.broadcast %cst_24 : f32 to vector<1x128xf32>
    %32 = arith.maximumf %30, %31 : vector<1x128xf32>
    %33 = arith.divf %21, %32 : vector<1x128xf32>
    %c0_25 = arith.constant 0 : index
    %c0_26 = arith.constant 0 : index
    %c0_27 = arith.constant 0 : index
    %34 = vector.load %arg8[%c0_25, %c0_26, %c0_27] : memref<1x1x128xf32, #tpu.memory_space<vmem>>, vector<1x1x128xf32>
    %35 = vector.shape_cast %34 : vector<1x1x128xf32> to vector<1x128xf32>
    %36 = vector.shape_cast %33 : vector<1x128xf32> to vector<1x1x128xf32>
    tpu.vector_store %arg8[%c0_25, %c0_26, %c0_27], %36 {strides = array<i32>} : memref<1x1x128xf32, #tpu.memory_space<vmem>>, vector<1x1x128xf32>,
    %37 = arith.mulf %14, %16 : vector<16x128xf32>
    %cst_28 = arith.constant dense<0.000000e+00> : vector<128xf32>
    %38 = vector.multi_reduction <add>, %37, %cst_28 [0] : vector<16x128xf32> to vector<128xf32>
    %39 = vector.shape_cast %38 : vector<128xf32> to vector<1x128xf32>
    %40 = arith.mulf %14, %14 : vector<16x128xf32>
    %cst_29 = arith.constant dense<0.000000e+00> : vector<128xf32>
    %41 = vector.multi_reduction <add>, %40, %cst_29 [0] : vector<16x128xf32> to vector<128xf32>
    %42 = vector.shape_cast %41 : vector<128xf32> to vector<1x128xf32>
    %43 = math.sqrt %42 : vector<1x128xf32>
    %44 = arith.mulf %16, %16 : vector<16x128xf32>
    %cst_30 = arith.constant dense<0.000000e+00> : vector<128xf32>
    %45 = vector.multi_reduction <add>, %44, %cst_30 [0] : vector<16x128xf32> to vector<128xf32>
    %46 = vector.shape_cast %45 : vector<128xf32> to vector<1x128xf32>
    %47 = math.sqrt %46 : vector<1x128xf32>
    %48 = arith.mulf %43, %47 : vector<1x128xf32>
    %cst_31 = arith.constant 9.99999993E-9 : f32
    %49 = vector.broadcast %cst_31 : f32 to vector<1x128xf32>
    %50 = arith.maximumf %48, %49 : vector<1x128xf32>
    %51 = arith.divf %39, %50 : vector<1x128xf32>
    %c0_32 = arith.constant 0 : index
    %c0_33 = arith.constant 0 : index
    %c0_34 = arith.constant 0 : index
    %52 = vector.load %arg9[%c0_32, %c0_33, %c0_34] : memref<1x1x128xf32, #tpu.memory_space<vmem>>, vector<1x1x128xf32>
    %53 = vector.shape_cast %52 : vector<1x1x128xf32> to vector<1x128xf32>
    %54 = vector.shape_cast %51 : vector<1x128xf32> to vector<1x1x128xf32>
    tpu.vector_store %arg9[%c0_32, %c0_33, %c0_34], %54 {strides = array<i32>} : memref<1x1x128xf32, #tpu.memory_space<vmem>>, vector<1x1x128xf32>,
    %55 = arith.mulf %6, %18 : vector<16x128xf32>
    %cst_35 = arith.constant dense<0.000000e+00> : vector<128xf32>
    %56 = vector.multi_reduction <add>, %55, %cst_35 [0] : vector<16x128xf32> to vector<128xf32>
    %57 = vector.shape_cast %56 : vector<128xf32> to vector<1x128xf32>
    %58 = arith.mulf %6, %6 : vector<16x128xf32>
    %cst_36 = arith.constant dense<0.000000e+00> : vector<128xf32>
    %59 = vector.multi_reduction <add>, %58, %cst_36 [0] : vector<16x128xf32> to vector<128xf32>
    %60 = vector.shape_cast %59 : vector<128xf32> to vector<1x128xf32>
    %61 = math.sqrt %60 : vector<1x128xf32>
    %62 = arith.mulf %18, %18 : vector<16x128xf32>
    %cst_37 = arith.constant dense<0.000000e+00> : vector<128xf32>
    %63 = vector.multi_reduction <add>, %62, %cst_37 [0] : vector<16x128xf32> to vector<128xf32>
    %64 = vector.shape_cast %63 : vector<128xf32> to vector<1x128xf32>
    %65 = math.sqrt %64 : vector<1x128xf32>
    %66 = arith.mulf %61, %65 : vector<1x128xf32>
    %cst_38 = arith.constant 9.99999993E-9 : f32
    %67 = vector.broadcast %cst_38 : f32 to vector<1x128xf32>
    %68 = arith.maximumf %66, %67 : vector<1x128xf32>
    %69 = arith.divf %57, %68 : vector<1x128xf32>
    %c0_39 = arith.constant 0 : index
    %c0_40 = arith.constant 0 : index
    %c0_41 = arith.constant 0 : index
    %70 = vector.load %arg10[%c0_39, %c0_40, %c0_41] : memref<1x1x128xf32, #tpu.memory_space<vmem>>, vector<1x1x128xf32>
    %71 = vector.shape_cast %70 : vector<1x1x128xf32> to vector<1x128xf32>
    %72 = vector.shape_cast %69 : vector<1x128xf32> to vector<1x1x128xf32>
    tpu.vector_store %arg10[%c0_39, %c0_40, %c0_41], %72 {strides = array<i32>} : memref<1x1x128xf32, #tpu.memory_space<vmem>>, vector<1x1x128xf32>,
    return
  }
  func.func @transform_0(%arg0: i32) -> (i32, i32, i32) {
    %c0_i32 = arith.constant 0 : i32
    %c0_i32_0 = arith.constant 0 : i32
    %c0_i32_1 = arith.constant 0 : i32
    return %arg0, %c0_i32, %c0_i32_0 : i32, i32, i32
  }
  func.func @transform_1(%arg0: i32) -> (i32, i32, i32) {
    %c0_i32 = arith.constant 0 : i32
    %c0_i32_0 = arith.constant 0 : i32
    %c0_i32_1 = arith.constant 0 : i32
    return %arg0, %c0_i32, %c0_i32_0 : i32, i32, i32
  }
  func.func @transform_2(%arg0: i32) -> (i32, i32, i32) {
    %c0_i32 = arith.constant 0 : i32
    %c0_i32_0 = arith.constant 0 : i32
    %c0_i32_1 = arith.constant 0 : i32
    return %arg0, %c0_i32, %c0_i32_0 : i32, i32, i32
  }
  func.func @transform_3(%arg0: i32) -> (i32, i32, i32) {
    %c0_i32 = arith.constant 0 : i32
    %c0_i32_0 = arith.constant 0 : i32
    %c0_i32_1 = arith.constant 0 : i32
    return %arg0, %c0_i32, %c0_i32_0 : i32, i32, i32
  }
  func.func @transform_4(%arg0: i32) -> (i32, i32, i32) {
    %c0_i32 = arith.constant 0 : i32
    %c0_i32_0 = arith.constant 0 : i32
    %c0_i32_1 = arith.constant 0 : i32
    return %arg0, %c0_i32, %c0_i32_0 : i32, i32, i32
  }
  func.func @transform_5(%arg0: i32) -> (i32, i32) {
    %c0_i32 = arith.constant 0 : i32
    %c0_i32_0 = arith.constant 0 : i32
    %c0_i32_1 = arith.constant 0 : i32
    return %c0_i32, %c0_i32_0 : i32, i32
  }
  func.func @transform_6(%arg0: i32) -> (i32, i32) {
    %c0_i32 = arith.constant 0 : i32
    %c0_i32_0 = arith.constant 0 : i32
    %c0_i32_1 = arith.constant 0 : i32
    return %c0_i32, %c0_i32_0 : i32, i32
  }
  func.func @transform_7(%arg0: i32) -> (i32, i32, i32) {
    %c0_i32 = arith.constant 0 : i32
    %c0_i32_0 = arith.constant 0 : i32
    %c0_i32_1 = arith.constant 0 : i32
    return %arg0, %c0_i32, %c0_i32_0 : i32, i32, i32
  }
  func.func @transform_8(%arg0: i32) -> (i32, i32, i32) {
    %c0_i32 = arith.constant 0 : i32
    %c0_i32_0 = arith.constant 0 : i32
    %c0_i32_1 = arith.constant 0 : i32
    return %arg0, %c0_i32, %c0_i32_0 : i32, i32, i32
  }
  func.func @transform_9(%arg0: i32) -> (i32, i32, i32) {
    %c0_i32 = arith.constant 0 : i32
    %c0_i32_0 = arith.constant 0 : i32
    %c0_i32_1 = arith.constant 0 : i32
    return %arg0, %c0_i32, %c0_i32_0 : i32, i32, i32
  }
}

module attributes {stable_mosaic.version = 11 : i64} {
  func.func @_mlp_path_kernel(%arg0: i32, %arg1: memref<2x2x32xf32, #tpu.memory_space<vmem>>, %arg2: memref<32x32xbf16, #tpu.memory_space<vmem>>, %arg3: memref<1x32xf32, #tpu.memory_space<vmem>>, %arg4: memref<1x32xf32, #tpu.memory_space<vmem>>, %arg5: memref<32x32xbf16, #tpu.memory_space<vmem>>, %arg6: memref<1x32xf32, #tpu.memory_space<vmem>>, %arg7: memref<1x32xf32, #tpu.memory_space<vmem>>, %arg8: memref<32x32xbf16, #tpu.memory_space<vmem>>, %arg9: memref<1x32xf32, #tpu.memory_space<vmem>>, %arg10: memref<1x32xf32, #tpu.memory_space<vmem>>, %arg11: memref<32x16xbf16, #tpu.memory_space<vmem>>, %arg12: memref<1x16xf32, #tpu.memory_space<vmem>>, %arg13: memref<1x16xf32, #tpu.memory_space<vmem>>, %arg14: memref<16x32xbf16, #tpu.memory_space<vmem>>, %arg15: memref<1x32xf32, #tpu.memory_space<vmem>>, %arg16: memref<2x1xf32, #tpu.memory_space<vmem>>, %arg17: memref<2x1xf32, #tpu.memory_space<vmem>>) attributes {dimension_semantics = [#tpu.dimension_semantics<arbitrary>], iteration_bounds = array<i64: 1>, scalar_prefetch = 0 : i64, scratch_operands = 0 : i64, tpu.core_type = #tpu.core_type<tc>, window_params = [{pipeline_mode = #tpu.pipeline_mode<synchronous>, transform_indices = @transform_0, window_bounds = array<i64: 2, 2, 32>}, {pipeline_mode = #tpu.pipeline_mode<synchronous>, transform_indices = @transform_1, window_bounds = array<i64: 32, 32>}, {pipeline_mode = #tpu.pipeline_mode<synchronous>, transform_indices = @transform_2, window_bounds = array<i64: 1, 32>}, {pipeline_mode = #tpu.pipeline_mode<synchronous>, transform_indices = @transform_3, window_bounds = array<i64: 1, 32>}, {pipeline_mode = #tpu.pipeline_mode<synchronous>, transform_indices = @transform_4, window_bounds = array<i64: 32, 32>}, {pipeline_mode = #tpu.pipeline_mode<synchronous>, transform_indices = @transform_5, window_bounds = array<i64: 1, 32>}, {pipeline_mode = #tpu.pipeline_mode<synchronous>, transform_indices = @transform_6, window_bounds = array<i64: 1, 32>}, {pipeline_mode = #tpu.pipeline_mode<synchronous>, transform_indices = @transform_7, window_bounds = array<i64: 32, 32>}, {pipeline_mode = #tpu.pipeline_mode<synchronous>, transform_indices = @transform_8, window_bounds = array<i64: 1, 32>}, {pipeline_mode = #tpu.pipeline_mode<synchronous>, transform_indices = @transform_9, window_bounds = array<i64: 1, 32>}, {pipeline_mode = #tpu.pipeline_mode<synchronous>, transform_indices = @transform_10, window_bounds = array<i64: 32, 16>}, {pipeline_mode = #tpu.pipeline_mode<synchronous>, transform_indices = @transform_11, window_bounds = array<i64: 1, 16>}, {pipeline_mode = #tpu.pipeline_mode<synchronous>, transform_indices = @transform_12, window_bounds = array<i64: 1, 16>}, {pipeline_mode = #tpu.pipeline_mode<synchronous>, transform_indices = @transform_13, window_bounds = array<i64: 16, 32>}, {pipeline_mode = #tpu.pipeline_mode<synchronous>, transform_indices = @transform_14, window_bounds = array<i64: 1, 32>}, {pipeline_mode = #tpu.pipeline_mode<synchronous>, transform_indices = @transform_15, window_bounds = array<i64: 2, 1>}, {pipeline_mode = #tpu.pipeline_mode<synchronous>, transform_indices = @transform_16, window_bounds = array<i64: 2, 1>}]} {
    %c0 = arith.constant 0 : index
    %c0_0 = arith.constant 0 : index
    %c0_1 = arith.constant 0 : index
    %0 = vector.load %arg1[%c0, %c0_0, %c0_1] : memref<2x2x32xf32, #tpu.memory_space<vmem>>, vector<1x2x32xf32>
    %1 = vector.shape_cast %0 : vector<1x2x32xf32> to vector<2x32xf32>
    %2 = arith.truncf %1 : vector<2x32xf32> to vector<2x32xbf16>
    %c0_2 = arith.constant 0 : index
    %c0_3 = arith.constant 0 : index
    %3 = vector.load %arg2[%c0_2, %c0_3] : memref<32x32xbf16, #tpu.memory_space<vmem>>, vector<32x32xbf16>
    %cst = arith.constant dense<0.000000e+00> : vector<2x32xf32>
    %4 = tpu.matmul %2, %3, %cst {dimension_numbers = #tpu.dot_dimension_numbers<[1], [0], [0], [1], [0, 0, 1, 1], [], []>} : vector<2x32xbf16>, vector<32x32xbf16>, vector<2x32xf32> -> vector<2x32xf32>
    %c0_4 = arith.constant 0 : index
    %c0_5 = arith.constant 0 : index
    %5 = vector.load %arg3[%c0_4, %c0_5] : memref<1x32xf32, #tpu.memory_space<vmem>>, vector<1x32xf32>
    %c0_6 = arith.constant 0 : index
    %c0_7 = arith.constant 0 : index
    %6 = vector.load %arg4[%c0_6, %c0_7] : memref<1x32xf32, #tpu.memory_space<vmem>>, vector<1x32xf32>
    %cst_8 = arith.constant dense<0.000000e+00> : vector<32xf32>
    %7 = vector.multi_reduction <add>, %4, %cst_8 [0] : vector<2x32xf32> to vector<32xf32>
    %8 = vector.shape_cast %7 : vector<32xf32> to vector<1x32xf32>
    %9 = arith.mulf %4, %4 : vector<2x32xf32>
    %cst_9 = arith.constant dense<0.000000e+00> : vector<32xf32>
    %10 = vector.multi_reduction <add>, %9, %cst_9 [0] : vector<2x32xf32> to vector<32xf32>
    %11 = vector.shape_cast %10 : vector<32xf32> to vector<1x32xf32>
    %cst_10 = arith.constant 5.000000e-01 : f32
    %12 = vector.broadcast %cst_10 : f32 to vector<1x32xf32>
    %13 = arith.mulf %8, %12 : vector<1x32xf32>
    %cst_11 = arith.constant 5.000000e-01 : f32
    %14 = vector.broadcast %cst_11 : f32 to vector<1x32xf32>
    %15 = arith.mulf %11, %14 : vector<1x32xf32>
    %16 = arith.mulf %13, %13 : vector<1x32xf32>
    %17 = arith.subf %15, %16 : vector<1x32xf32>
    %cst_12 = arith.constant 0.000000e+00 : f32
    %18 = vector.broadcast %cst_12 : f32 to vector<1x32xf32>
    %19 = arith.maximumf %17, %18 : vector<1x32xf32>
    %20 = vector.broadcast %13 : vector<1x32xf32> to vector<2x32xf32>
    %21 = arith.subf %4, %20 : vector<2x32xf32>
    %cst_13 = arith.constant 9.99999974E-6 : f32
    %22 = vector.broadcast %cst_13 : f32 to vector<1x32xf32>
    %23 = arith.addf %19, %22 : vector<1x32xf32>
    %24 = math.rsqrt %23 : vector<1x32xf32>
    %25 = vector.broadcast %24 : vector<1x32xf32> to vector<2x32xf32>
    %26 = arith.mulf %21, %25 : vector<2x32xf32>
    %27 = vector.broadcast %5 : vector<1x32xf32> to vector<2x32xf32>
    %28 = arith.mulf %26, %27 : vector<2x32xf32>
    %29 = vector.broadcast %6 : vector<1x32xf32> to vector<2x32xf32>
    %30 = arith.addf %28, %29 : vector<2x32xf32>
    %cst_14 = arith.constant 0.000000e+00 : f32
    %31 = vector.broadcast %cst_14 : f32 to vector<2x32xf32>
    %32 = arith.maximumf %30, %31 : vector<2x32xf32>
    %33 = arith.truncf %32 : vector<2x32xf32> to vector<2x32xbf16>
    %c0_15 = arith.constant 0 : index
    %c0_16 = arith.constant 0 : index
    %34 = vector.load %arg5[%c0_15, %c0_16] : memref<32x32xbf16, #tpu.memory_space<vmem>>, vector<32x32xbf16>
    %cst_17 = arith.constant dense<0.000000e+00> : vector<2x32xf32>
    %35 = tpu.matmul %33, %34, %cst_17 {dimension_numbers = #tpu.dot_dimension_numbers<[1], [0], [0], [1], [0, 0, 1, 1], [], []>} : vector<2x32xbf16>, vector<32x32xbf16>, vector<2x32xf32> -> vector<2x32xf32>
    %c0_18 = arith.constant 0 : index
    %c0_19 = arith.constant 0 : index
    %36 = vector.load %arg6[%c0_18, %c0_19] : memref<1x32xf32, #tpu.memory_space<vmem>>, vector<1x32xf32>
    %c0_20 = arith.constant 0 : index
    %c0_21 = arith.constant 0 : index
    %37 = vector.load %arg7[%c0_20, %c0_21] : memref<1x32xf32, #tpu.memory_space<vmem>>, vector<1x32xf32>
    %cst_22 = arith.constant dense<0.000000e+00> : vector<32xf32>
    %38 = vector.multi_reduction <add>, %35, %cst_22 [0] : vector<2x32xf32> to vector<32xf32>
    %39 = vector.shape_cast %38 : vector<32xf32> to vector<1x32xf32>
    %40 = arith.mulf %35, %35 : vector<2x32xf32>
    %cst_23 = arith.constant dense<0.000000e+00> : vector<32xf32>
    %41 = vector.multi_reduction <add>, %40, %cst_23 [0] : vector<2x32xf32> to vector<32xf32>
    %42 = vector.shape_cast %41 : vector<32xf32> to vector<1x32xf32>
    %cst_24 = arith.constant 5.000000e-01 : f32
    %43 = vector.broadcast %cst_24 : f32 to vector<1x32xf32>
    %44 = arith.mulf %39, %43 : vector<1x32xf32>
    %cst_25 = arith.constant 5.000000e-01 : f32
    %45 = vector.broadcast %cst_25 : f32 to vector<1x32xf32>
    %46 = arith.mulf %42, %45 : vector<1x32xf32>
    %47 = arith.mulf %44, %44 : vector<1x32xf32>
    %48 = arith.subf %46, %47 : vector<1x32xf32>
    %cst_26 = arith.constant 0.000000e+00 : f32
    %49 = vector.broadcast %cst_26 : f32 to vector<1x32xf32>
    %50 = arith.maximumf %48, %49 : vector<1x32xf32>
    %51 = vector.broadcast %44 : vector<1x32xf32> to vector<2x32xf32>
    %52 = arith.subf %35, %51 : vector<2x32xf32>
    %cst_27 = arith.constant 9.99999974E-6 : f32
    %53 = vector.broadcast %cst_27 : f32 to vector<1x32xf32>
    %54 = arith.addf %50, %53 : vector<1x32xf32>
    %55 = math.rsqrt %54 : vector<1x32xf32>
    %56 = vector.broadcast %55 : vector<1x32xf32> to vector<2x32xf32>
    %57 = arith.mulf %52, %56 : vector<2x32xf32>
    %58 = vector.broadcast %36 : vector<1x32xf32> to vector<2x32xf32>
    %59 = arith.mulf %57, %58 : vector<2x32xf32>
    %60 = vector.broadcast %37 : vector<1x32xf32> to vector<2x32xf32>
    %61 = arith.addf %59, %60 : vector<2x32xf32>
    %cst_28 = arith.constant 0.000000e+00 : f32
    %62 = vector.broadcast %cst_28 : f32 to vector<2x32xf32>
    %63 = arith.maximumf %61, %62 : vector<2x32xf32>
    %64 = arith.truncf %63 : vector<2x32xf32> to vector<2x32xbf16>
    %c0_29 = arith.constant 0 : index
    %c0_30 = arith.constant 0 : index
    %65 = vector.load %arg8[%c0_29, %c0_30] : memref<32x32xbf16, #tpu.memory_space<vmem>>, vector<32x32xbf16>
    %cst_31 = arith.constant dense<0.000000e+00> : vector<2x32xf32>
    %66 = tpu.matmul %64, %65, %cst_31 {dimension_numbers = #tpu.dot_dimension_numbers<[1], [0], [0], [1], [0, 0, 1, 1], [], []>} : vector<2x32xbf16>, vector<32x32xbf16>, vector<2x32xf32> -> vector<2x32xf32>
    %c0_32 = arith.constant 0 : index
    %c0_33 = arith.constant 0 : index
    %67 = vector.load %arg9[%c0_32, %c0_33] : memref<1x32xf32, #tpu.memory_space<vmem>>, vector<1x32xf32>
    %c0_34 = arith.constant 0 : index
    %c0_35 = arith.constant 0 : index
    %68 = vector.load %arg10[%c0_34, %c0_35] : memref<1x32xf32, #tpu.memory_space<vmem>>, vector<1x32xf32>
    %cst_36 = arith.constant dense<0.000000e+00> : vector<32xf32>
    %69 = vector.multi_reduction <add>, %66, %cst_36 [0] : vector<2x32xf32> to vector<32xf32>
    %70 = vector.shape_cast %69 : vector<32xf32> to vector<1x32xf32>
    %71 = arith.mulf %66, %66 : vector<2x32xf32>
    %cst_37 = arith.constant dense<0.000000e+00> : vector<32xf32>
    %72 = vector.multi_reduction <add>, %71, %cst_37 [0] : vector<2x32xf32> to vector<32xf32>
    %73 = vector.shape_cast %72 : vector<32xf32> to vector<1x32xf32>
    %cst_38 = arith.constant 5.000000e-01 : f32
    %74 = vector.broadcast %cst_38 : f32 to vector<1x32xf32>
    %75 = arith.mulf %70, %74 : vector<1x32xf32>
    %cst_39 = arith.constant 5.000000e-01 : f32
    %76 = vector.broadcast %cst_39 : f32 to vector<1x32xf32>
    %77 = arith.mulf %73, %76 : vector<1x32xf32>
    %78 = arith.mulf %75, %75 : vector<1x32xf32>
    %79 = arith.subf %77, %78 : vector<1x32xf32>
    %cst_40 = arith.constant 0.000000e+00 : f32
    %80 = vector.broadcast %cst_40 : f32 to vector<1x32xf32>
    %81 = arith.maximumf %79, %80 : vector<1x32xf32>
    %82 = vector.broadcast %75 : vector<1x32xf32> to vector<2x32xf32>
    %83 = arith.subf %66, %82 : vector<2x32xf32>
    %cst_41 = arith.constant 9.99999974E-6 : f32
    %84 = vector.broadcast %cst_41 : f32 to vector<1x32xf32>
    %85 = arith.addf %81, %84 : vector<1x32xf32>
    %86 = math.rsqrt %85 : vector<1x32xf32>
    %87 = vector.broadcast %86 : vector<1x32xf32> to vector<2x32xf32>
    %88 = arith.mulf %83, %87 : vector<2x32xf32>
    %89 = vector.broadcast %67 : vector<1x32xf32> to vector<2x32xf32>
    %90 = arith.mulf %88, %89 : vector<2x32xf32>
    %91 = vector.broadcast %68 : vector<1x32xf32> to vector<2x32xf32>
    %92 = arith.addf %90, %91 : vector<2x32xf32>
    %93 = arith.truncf %92 : vector<2x32xf32> to vector<2x32xbf16>
    %c0_42 = arith.constant 0 : index
    %c0_43 = arith.constant 0 : index
    %94 = vector.load %arg11[%c0_42, %c0_43] : memref<32x16xbf16, #tpu.memory_space<vmem>>, vector<32x16xbf16>
    %cst_44 = arith.constant dense<0.000000e+00> : vector<2x16xf32>
    %95 = tpu.matmul %93, %94, %cst_44 {dimension_numbers = #tpu.dot_dimension_numbers<[1], [0], [0], [1], [0, 0, 1, 1], [], []>} : vector<2x32xbf16>, vector<32x16xbf16>, vector<2x16xf32> -> vector<2x16xf32>
    %c0_45 = arith.constant 0 : index
    %c0_46 = arith.constant 0 : index
    %96 = vector.load %arg12[%c0_45, %c0_46] : memref<1x16xf32, #tpu.memory_space<vmem>>, vector<1x16xf32>
    %c0_47 = arith.constant 0 : index
    %c0_48 = arith.constant 0 : index
    %97 = vector.load %arg13[%c0_47, %c0_48] : memref<1x16xf32, #tpu.memory_space<vmem>>, vector<1x16xf32>
    %cst_49 = arith.constant dense<0.000000e+00> : vector<16xf32>
    %98 = vector.multi_reduction <add>, %95, %cst_49 [0] : vector<2x16xf32> to vector<16xf32>
    %99 = vector.shape_cast %98 : vector<16xf32> to vector<1x16xf32>
    %100 = arith.mulf %95, %95 : vector<2x16xf32>
    %cst_50 = arith.constant dense<0.000000e+00> : vector<16xf32>
    %101 = vector.multi_reduction <add>, %100, %cst_50 [0] : vector<2x16xf32> to vector<16xf32>
    %102 = vector.shape_cast %101 : vector<16xf32> to vector<1x16xf32>
    %cst_51 = arith.constant 5.000000e-01 : f32
    %103 = vector.broadcast %cst_51 : f32 to vector<1x16xf32>
    %104 = arith.mulf %99, %103 : vector<1x16xf32>
    %cst_52 = arith.constant 5.000000e-01 : f32
    %105 = vector.broadcast %cst_52 : f32 to vector<1x16xf32>
    %106 = arith.mulf %102, %105 : vector<1x16xf32>
    %107 = arith.mulf %104, %104 : vector<1x16xf32>
    %108 = arith.subf %106, %107 : vector<1x16xf32>
    %cst_53 = arith.constant 0.000000e+00 : f32
    %109 = vector.broadcast %cst_53 : f32 to vector<1x16xf32>
    %110 = arith.maximumf %108, %109 : vector<1x16xf32>
    %111 = vector.broadcast %104 : vector<1x16xf32> to vector<2x16xf32>
    %112 = arith.subf %95, %111 : vector<2x16xf32>
    %cst_54 = arith.constant 9.99999974E-6 : f32
    %113 = vector.broadcast %cst_54 : f32 to vector<1x16xf32>
    %114 = arith.addf %110, %113 : vector<1x16xf32>
    %115 = math.rsqrt %114 : vector<1x16xf32>
    %116 = vector.broadcast %115 : vector<1x16xf32> to vector<2x16xf32>
    %117 = arith.mulf %112, %116 : vector<2x16xf32>
    %118 = vector.broadcast %96 : vector<1x16xf32> to vector<2x16xf32>
    %119 = arith.mulf %117, %118 : vector<2x16xf32>
    %120 = vector.broadcast %97 : vector<1x16xf32> to vector<2x16xf32>
    %121 = arith.addf %119, %120 : vector<2x16xf32>
    %cst_55 = arith.constant 0.000000e+00 : f32
    %122 = vector.broadcast %cst_55 : f32 to vector<2x16xf32>
    %123 = arith.maximumf %121, %122 : vector<2x16xf32>
    %124 = arith.truncf %123 : vector<2x16xf32> to vector<2x16xbf16>
    %c0_56 = arith.constant 0 : index
    %c0_57 = arith.constant 0 : index
    %125 = vector.load %arg14[%c0_56, %c0_57] : memref<16x32xbf16, #tpu.memory_space<vmem>>, vector<16x32xbf16>
    %cst_58 = arith.constant dense<0.000000e+00> : vector<2x32xf32>
    %126 = tpu.matmul %124, %125, %cst_58 {dimension_numbers = #tpu.dot_dimension_numbers<[1], [0], [0], [1], [0, 0, 1, 1], [], []>} : vector<2x16xbf16>, vector<16x32xbf16>, vector<2x32xf32> -> vector<2x32xf32>
    %c0_59 = arith.constant 0 : index
    %c0_60 = arith.constant 0 : index
    %127 = vector.load %arg15[%c0_59, %c0_60] : memref<1x32xf32, #tpu.memory_space<vmem>>, vector<1x32xf32>
    %128 = vector.broadcast %127 : vector<1x32xf32> to vector<2x32xf32>
    %129 = arith.addf %126, %128 : vector<2x32xf32>
    %c1 = arith.constant 1 : index
    %c0_61 = arith.constant 0 : index
    %c0_62 = arith.constant 0 : index
    %130 = vector.load %arg1[%c1, %c0_61, %c0_62] : memref<2x2x32xf32, #tpu.memory_space<vmem>>, vector<1x2x32xf32>
    %131 = vector.shape_cast %130 : vector<1x2x32xf32> to vector<2x32xf32>
    %132 = arith.truncf %131 : vector<2x32xf32> to vector<2x32xbf16>
    %c0_63 = arith.constant 0 : index
    %c0_64 = arith.constant 0 : index
    %133 = vector.load %arg2[%c0_63, %c0_64] : memref<32x32xbf16, #tpu.memory_space<vmem>>, vector<32x32xbf16>
    %cst_65 = arith.constant dense<0.000000e+00> : vector<2x32xf32>
    %134 = tpu.matmul %132, %133, %cst_65 {dimension_numbers = #tpu.dot_dimension_numbers<[1], [0], [0], [1], [0, 0, 1, 1], [], []>} : vector<2x32xbf16>, vector<32x32xbf16>, vector<2x32xf32> -> vector<2x32xf32>
    %c0_66 = arith.constant 0 : index
    %c0_67 = arith.constant 0 : index
    %135 = vector.load %arg3[%c0_66, %c0_67] : memref<1x32xf32, #tpu.memory_space<vmem>>, vector<1x32xf32>
    %c0_68 = arith.constant 0 : index
    %c0_69 = arith.constant 0 : index
    %136 = vector.load %arg4[%c0_68, %c0_69] : memref<1x32xf32, #tpu.memory_space<vmem>>, vector<1x32xf32>
    %cst_70 = arith.constant dense<0.000000e+00> : vector<32xf32>
    %137 = vector.multi_reduction <add>, %134, %cst_70 [0] : vector<2x32xf32> to vector<32xf32>
    %138 = vector.shape_cast %137 : vector<32xf32> to vector<1x32xf32>
    %139 = arith.mulf %134, %134 : vector<2x32xf32>
    %cst_71 = arith.constant dense<0.000000e+00> : vector<32xf32>
    %140 = vector.multi_reduction <add>, %139, %cst_71 [0] : vector<2x32xf32> to vector<32xf32>
    %141 = vector.shape_cast %140 : vector<32xf32> to vector<1x32xf32>
    %cst_72 = arith.constant 5.000000e-01 : f32
    %142 = vector.broadcast %cst_72 : f32 to vector<1x32xf32>
    %143 = arith.mulf %138, %142 : vector<1x32xf32>
    %cst_73 = arith.constant 5.000000e-01 : f32
    %144 = vector.broadcast %cst_73 : f32 to vector<1x32xf32>
    %145 = arith.mulf %141, %144 : vector<1x32xf32>
    %146 = arith.mulf %143, %143 : vector<1x32xf32>
    %147 = arith.subf %145, %146 : vector<1x32xf32>
    %cst_74 = arith.constant 0.000000e+00 : f32
    %148 = vector.broadcast %cst_74 : f32 to vector<1x32xf32>
    %149 = arith.maximumf %147, %148 : vector<1x32xf32>
    %150 = vector.broadcast %143 : vector<1x32xf32> to vector<2x32xf32>
    %151 = arith.subf %134, %150 : vector<2x32xf32>
    %cst_75 = arith.constant 9.99999974E-6 : f32
    %152 = vector.broadcast %cst_75 : f32 to vector<1x32xf32>
    %153 = arith.addf %149, %152 : vector<1x32xf32>
    %154 = math.rsqrt %153 : vector<1x32xf32>
    %155 = vector.broadcast %154 : vector<1x32xf32> to vector<2x32xf32>
    %156 = arith.mulf %151, %155 : vector<2x32xf32>
    %157 = vector.broadcast %135 : vector<1x32xf32> to vector<2x32xf32>
    %158 = arith.mulf %156, %157 : vector<2x32xf32>
    %159 = vector.broadcast %136 : vector<1x32xf32> to vector<2x32xf32>
    %160 = arith.addf %158, %159 : vector<2x32xf32>
    %cst_76 = arith.constant 0.000000e+00 : f32
    %161 = vector.broadcast %cst_76 : f32 to vector<2x32xf32>
    %162 = arith.maximumf %160, %161 : vector<2x32xf32>
    %163 = arith.truncf %162 : vector<2x32xf32> to vector<2x32xbf16>
    %c0_77 = arith.constant 0 : index
    %c0_78 = arith.constant 0 : index
    %164 = vector.load %arg5[%c0_77, %c0_78] : memref<32x32xbf16, #tpu.memory_space<vmem>>, vector<32x32xbf16>
    %cst_79 = arith.constant dense<0.000000e+00> : vector<2x32xf32>
    %165 = tpu.matmul %163, %164, %cst_79 {dimension_numbers = #tpu.dot_dimension_numbers<[1], [0], [0], [1], [0, 0, 1, 1], [], []>} : vector<2x32xbf16>, vector<32x32xbf16>, vector<2x32xf32> -> vector<2x32xf32>
    %c0_80 = arith.constant 0 : index
    %c0_81 = arith.constant 0 : index
    %166 = vector.load %arg6[%c0_80, %c0_81] : memref<1x32xf32, #tpu.memory_space<vmem>>, vector<1x32xf32>
    %c0_82 = arith.constant 0 : index
    %c0_83 = arith.constant 0 : index
    %167 = vector.load %arg7[%c0_82, %c0_83] : memref<1x32xf32, #tpu.memory_space<vmem>>, vector<1x32xf32>
    %cst_84 = arith.constant dense<0.000000e+00> : vector<32xf32>
    %168 = vector.multi_reduction <add>, %165, %cst_84 [0] : vector<2x32xf32> to vector<32xf32>
    %169 = vector.shape_cast %168 : vector<32xf32> to vector<1x32xf32>
    %170 = arith.mulf %165, %165 : vector<2x32xf32>
    %cst_85 = arith.constant dense<0.000000e+00> : vector<32xf32>
    %171 = vector.multi_reduction <add>, %170, %cst_85 [0] : vector<2x32xf32> to vector<32xf32>
    %172 = vector.shape_cast %171 : vector<32xf32> to vector<1x32xf32>
    %cst_86 = arith.constant 5.000000e-01 : f32
    %173 = vector.broadcast %cst_86 : f32 to vector<1x32xf32>
    %174 = arith.mulf %169, %173 : vector<1x32xf32>
    %cst_87 = arith.constant 5.000000e-01 : f32
    %175 = vector.broadcast %cst_87 : f32 to vector<1x32xf32>
    %176 = arith.mulf %172, %175 : vector<1x32xf32>
    %177 = arith.mulf %174, %174 : vector<1x32xf32>
    %178 = arith.subf %176, %177 : vector<1x32xf32>
    %cst_88 = arith.constant 0.000000e+00 : f32
    %179 = vector.broadcast %cst_88 : f32 to vector<1x32xf32>
    %180 = arith.maximumf %178, %179 : vector<1x32xf32>
    %181 = vector.broadcast %174 : vector<1x32xf32> to vector<2x32xf32>
    %182 = arith.subf %165, %181 : vector<2x32xf32>
    %cst_89 = arith.constant 9.99999974E-6 : f32
    %183 = vector.broadcast %cst_89 : f32 to vector<1x32xf32>
    %184 = arith.addf %180, %183 : vector<1x32xf32>
    %185 = math.rsqrt %184 : vector<1x32xf32>
    %186 = vector.broadcast %185 : vector<1x32xf32> to vector<2x32xf32>
    %187 = arith.mulf %182, %186 : vector<2x32xf32>
    %188 = vector.broadcast %166 : vector<1x32xf32> to vector<2x32xf32>
    %189 = arith.mulf %187, %188 : vector<2x32xf32>
    %190 = vector.broadcast %167 : vector<1x32xf32> to vector<2x32xf32>
    %191 = arith.addf %189, %190 : vector<2x32xf32>
    %cst_90 = arith.constant 0.000000e+00 : f32
    %192 = vector.broadcast %cst_90 : f32 to vector<2x32xf32>
    %193 = arith.maximumf %191, %192 : vector<2x32xf32>
    %194 = arith.truncf %193 : vector<2x32xf32> to vector<2x32xbf16>
    %c0_91 = arith.constant 0 : index
    %c0_92 = arith.constant 0 : index
    %195 = vector.load %arg8[%c0_91, %c0_92] : memref<32x32xbf16, #tpu.memory_space<vmem>>, vector<32x32xbf16>
    %cst_93 = arith.constant dense<0.000000e+00> : vector<2x32xf32>
    %196 = tpu.matmul %194, %195, %cst_93 {dimension_numbers = #tpu.dot_dimension_numbers<[1], [0], [0], [1], [0, 0, 1, 1], [], []>} : vector<2x32xbf16>, vector<32x32xbf16>, vector<2x32xf32> -> vector<2x32xf32>
    %c0_94 = arith.constant 0 : index
    %c0_95 = arith.constant 0 : index
    %197 = vector.load %arg9[%c0_94, %c0_95] : memref<1x32xf32, #tpu.memory_space<vmem>>, vector<1x32xf32>
    %c0_96 = arith.constant 0 : index
    %c0_97 = arith.constant 0 : index
    %198 = vector.load %arg10[%c0_96, %c0_97] : memref<1x32xf32, #tpu.memory_space<vmem>>, vector<1x32xf32>
    %cst_98 = arith.constant dense<0.000000e+00> : vector<32xf32>
    %199 = vector.multi_reduction <add>, %196, %cst_98 [0] : vector<2x32xf32> to vector<32xf32>
    %200 = vector.shape_cast %199 : vector<32xf32> to vector<1x32xf32>
    %201 = arith.mulf %196, %196 : vector<2x32xf32>
    %cst_99 = arith.constant dense<0.000000e+00> : vector<32xf32>
    %202 = vector.multi_reduction <add>, %201, %cst_99 [0] : vector<2x32xf32> to vector<32xf32>
    %203 = vector.shape_cast %202 : vector<32xf32> to vector<1x32xf32>
    %cst_100 = arith.constant 5.000000e-01 : f32
    %204 = vector.broadcast %cst_100 : f32 to vector<1x32xf32>
    %205 = arith.mulf %200, %204 : vector<1x32xf32>
    %cst_101 = arith.constant 5.000000e-01 : f32
    %206 = vector.broadcast %cst_101 : f32 to vector<1x32xf32>
    %207 = arith.mulf %203, %206 : vector<1x32xf32>
    %208 = arith.mulf %205, %205 : vector<1x32xf32>
    %209 = arith.subf %207, %208 : vector<1x32xf32>
    %cst_102 = arith.constant 0.000000e+00 : f32
    %210 = vector.broadcast %cst_102 : f32 to vector<1x32xf32>
    %211 = arith.maximumf %209, %210 : vector<1x32xf32>
    %212 = vector.broadcast %205 : vector<1x32xf32> to vector<2x32xf32>
    %213 = arith.subf %196, %212 : vector<2x32xf32>
    %cst_103 = arith.constant 9.99999974E-6 : f32
    %214 = vector.broadcast %cst_103 : f32 to vector<1x32xf32>
    %215 = arith.addf %211, %214 : vector<1x32xf32>
    %216 = math.rsqrt %215 : vector<1x32xf32>
    %217 = vector.broadcast %216 : vector<1x32xf32> to vector<2x32xf32>
    %218 = arith.mulf %213, %217 : vector<2x32xf32>
    %219 = vector.broadcast %197 : vector<1x32xf32> to vector<2x32xf32>
    %220 = arith.mulf %218, %219 : vector<2x32xf32>
    %221 = vector.broadcast %198 : vector<1x32xf32> to vector<2x32xf32>
    %222 = arith.addf %220, %221 : vector<2x32xf32>
    %223 = arith.truncf %222 : vector<2x32xf32> to vector<2x32xbf16>
    %c0_104 = arith.constant 0 : index
    %c0_105 = arith.constant 0 : index
    %224 = vector.load %arg11[%c0_104, %c0_105] : memref<32x16xbf16, #tpu.memory_space<vmem>>, vector<32x16xbf16>
    %cst_106 = arith.constant dense<0.000000e+00> : vector<2x16xf32>
    %225 = tpu.matmul %223, %224, %cst_106 {dimension_numbers = #tpu.dot_dimension_numbers<[1], [0], [0], [1], [0, 0, 1, 1], [], []>} : vector<2x32xbf16>, vector<32x16xbf16>, vector<2x16xf32> -> vector<2x16xf32>
    %c0_107 = arith.constant 0 : index
    %c0_108 = arith.constant 0 : index
    %226 = vector.load %arg12[%c0_107, %c0_108] : memref<1x16xf32, #tpu.memory_space<vmem>>, vector<1x16xf32>
    %c0_109 = arith.constant 0 : index
    %c0_110 = arith.constant 0 : index
    %227 = vector.load %arg13[%c0_109, %c0_110] : memref<1x16xf32, #tpu.memory_space<vmem>>, vector<1x16xf32>
    %cst_111 = arith.constant dense<0.000000e+00> : vector<16xf32>
    %228 = vector.multi_reduction <add>, %225, %cst_111 [0] : vector<2x16xf32> to vector<16xf32>
    %229 = vector.shape_cast %228 : vector<16xf32> to vector<1x16xf32>
    %230 = arith.mulf %225, %225 : vector<2x16xf32>
    %cst_112 = arith.constant dense<0.000000e+00> : vector<16xf32>
    %231 = vector.multi_reduction <add>, %230, %cst_112 [0] : vector<2x16xf32> to vector<16xf32>
    %232 = vector.shape_cast %231 : vector<16xf32> to vector<1x16xf32>
    %cst_113 = arith.constant 5.000000e-01 : f32
    %233 = vector.broadcast %cst_113 : f32 to vector<1x16xf32>
    %234 = arith.mulf %229, %233 : vector<1x16xf32>
    %cst_114 = arith.constant 5.000000e-01 : f32
    %235 = vector.broadcast %cst_114 : f32 to vector<1x16xf32>
    %236 = arith.mulf %232, %235 : vector<1x16xf32>
    %237 = arith.mulf %234, %234 : vector<1x16xf32>
    %238 = arith.subf %236, %237 : vector<1x16xf32>
    %cst_115 = arith.constant 0.000000e+00 : f32
    %239 = vector.broadcast %cst_115 : f32 to vector<1x16xf32>
    %240 = arith.maximumf %238, %239 : vector<1x16xf32>
    %241 = vector.broadcast %234 : vector<1x16xf32> to vector<2x16xf32>
    %242 = arith.subf %225, %241 : vector<2x16xf32>
    %cst_116 = arith.constant 9.99999974E-6 : f32
    %243 = vector.broadcast %cst_116 : f32 to vector<1x16xf32>
    %244 = arith.addf %240, %243 : vector<1x16xf32>
    %245 = math.rsqrt %244 : vector<1x16xf32>
    %246 = vector.broadcast %245 : vector<1x16xf32> to vector<2x16xf32>
    %247 = arith.mulf %242, %246 : vector<2x16xf32>
    %248 = vector.broadcast %226 : vector<1x16xf32> to vector<2x16xf32>
    %249 = arith.mulf %247, %248 : vector<2x16xf32>
    %250 = vector.broadcast %227 : vector<1x16xf32> to vector<2x16xf32>
    %251 = arith.addf %249, %250 : vector<2x16xf32>
    %cst_117 = arith.constant 0.000000e+00 : f32
    %252 = vector.broadcast %cst_117 : f32 to vector<2x16xf32>
    %253 = arith.maximumf %251, %252 : vector<2x16xf32>
    %254 = arith.truncf %253 : vector<2x16xf32> to vector<2x16xbf16>
    %c0_118 = arith.constant 0 : index
    %c0_119 = arith.constant 0 : index
    %255 = vector.load %arg14[%c0_118, %c0_119] : memref<16x32xbf16, #tpu.memory_space<vmem>>, vector<16x32xbf16>
    %cst_120 = arith.constant dense<0.000000e+00> : vector<2x32xf32>
    %256 = tpu.matmul %254, %255, %cst_120 {dimension_numbers = #tpu.dot_dimension_numbers<[1], [0], [0], [1], [0, 0, 1, 1], [], []>} : vector<2x16xbf16>, vector<16x32xbf16>, vector<2x32xf32> -> vector<2x32xf32>
    %c0_121 = arith.constant 0 : index
    %c0_122 = arith.constant 0 : index
    %257 = vector.load %arg15[%c0_121, %c0_122] : memref<1x32xf32, #tpu.memory_space<vmem>>, vector<1x32xf32>
    %258 = vector.broadcast %257 : vector<1x32xf32> to vector<2x32xf32>
    %259 = arith.addf %256, %258 : vector<2x32xf32>
    %260 = arith.mulf %129, %222 : vector<2x32xf32>
    %cst_123 = arith.constant dense<0.000000e+00> : vector<2xf32>
    %261 = vector.multi_reduction <add>, %260, %cst_123 [1] : vector<2x32xf32> to vector<2xf32>
    %262 = vector.shape_cast %261 : vector<2xf32> to vector<2x1xf32>
    %263 = arith.mulf %129, %129 : vector<2x32xf32>
    %cst_124 = arith.constant dense<0.000000e+00> : vector<2xf32>
    %264 = vector.multi_reduction <add>, %263, %cst_124 [1] : vector<2x32xf32> to vector<2xf32>
    %265 = vector.shape_cast %264 : vector<2xf32> to vector<2x1xf32>
    %266 = math.sqrt %265 : vector<2x1xf32>
    %267 = arith.mulf %222, %222 : vector<2x32xf32>
    %cst_125 = arith.constant dense<0.000000e+00> : vector<2xf32>
    %268 = vector.multi_reduction <add>, %267, %cst_125 [1] : vector<2x32xf32> to vector<2xf32>
    %269 = vector.shape_cast %268 : vector<2xf32> to vector<2x1xf32>
    %270 = math.sqrt %269 : vector<2x1xf32>
    %271 = arith.mulf %266, %270 : vector<2x1xf32>
    %cst_126 = arith.constant 9.99999993E-9 : f32
    %272 = vector.broadcast %cst_126 : f32 to vector<2x1xf32>
    %273 = arith.maximumf %271, %272 : vector<2x1xf32>
    %274 = arith.divf %262, %273 : vector<2x1xf32>
    %c0_127 = arith.constant 0 : index
    %c0_128 = arith.constant 0 : index
    %275 = vector.load %arg16[%c0_127, %c0_128] : memref<2x1xf32, #tpu.memory_space<vmem>>, vector<2x1xf32>
    tpu.vector_store %arg16[%c0_127, %c0_128], %274 {strides = array<i32>} : memref<2x1xf32, #tpu.memory_space<vmem>>, vector<2x1xf32>,
    %276 = arith.mulf %259, %92 : vector<2x32xf32>
    %cst_129 = arith.constant dense<0.000000e+00> : vector<2xf32>
    %277 = vector.multi_reduction <add>, %276, %cst_129 [1] : vector<2x32xf32> to vector<2xf32>
    %278 = vector.shape_cast %277 : vector<2xf32> to vector<2x1xf32>
    %279 = arith.mulf %259, %259 : vector<2x32xf32>
    %cst_130 = arith.constant dense<0.000000e+00> : vector<2xf32>
    %280 = vector.multi_reduction <add>, %279, %cst_130 [1] : vector<2x32xf32> to vector<2xf32>
    %281 = vector.shape_cast %280 : vector<2xf32> to vector<2x1xf32>
    %282 = math.sqrt %281 : vector<2x1xf32>
    %283 = arith.mulf %92, %92 : vector<2x32xf32>
    %cst_131 = arith.constant dense<0.000000e+00> : vector<2xf32>
    %284 = vector.multi_reduction <add>, %283, %cst_131 [1] : vector<2x32xf32> to vector<2xf32>
    %285 = vector.shape_cast %284 : vector<2xf32> to vector<2x1xf32>
    %286 = math.sqrt %285 : vector<2x1xf32>
    %287 = arith.mulf %282, %286 : vector<2x1xf32>
    %cst_132 = arith.constant 9.99999993E-9 : f32
    %288 = vector.broadcast %cst_132 : f32 to vector<2x1xf32>
    %289 = arith.maximumf %287, %288 : vector<2x1xf32>
    %290 = arith.divf %278, %289 : vector<2x1xf32>
    %c0_133 = arith.constant 0 : index
    %c0_134 = arith.constant 0 : index
    %291 = vector.load %arg17[%c0_133, %c0_134] : memref<2x1xf32, #tpu.memory_space<vmem>>, vector<2x1xf32>
    tpu.vector_store %arg17[%c0_133, %c0_134], %290 {strides = array<i32>} : memref<2x1xf32, #tpu.memory_space<vmem>>, vector<2x1xf32>,
    return
  }
  func.func @transform_0(%arg0: i32) -> (i32, i32, i32) {
    %c0_i32 = arith.constant 0 : i32
    %c0_i32_0 = arith.constant 0 : i32
    %c0_i32_1 = arith.constant 0 : i32
    %c0_i32_2 = arith.constant 0 : i32
    return %c0_i32, %c0_i32_0, %c0_i32_1 : i32, i32, i32
  }
  func.func @transform_1(%arg0: i32) -> (i32, i32) {
    %c0_i32 = arith.constant 0 : i32
    %c0_i32_0 = arith.constant 0 : i32
    %c0_i32_1 = arith.constant 0 : i32
    return %c0_i32, %c0_i32_0 : i32, i32
  }
  func.func @transform_2(%arg0: i32) -> (i32, i32) {
    %c0_i32 = arith.constant 0 : i32
    %c0_i32_0 = arith.constant 0 : i32
    %c0_i32_1 = arith.constant 0 : i32
    return %c0_i32, %c0_i32_0 : i32, i32
  }
  func.func @transform_3(%arg0: i32) -> (i32, i32) {
    %c0_i32 = arith.constant 0 : i32
    %c0_i32_0 = arith.constant 0 : i32
    %c0_i32_1 = arith.constant 0 : i32
    return %c0_i32, %c0_i32_0 : i32, i32
  }
  func.func @transform_4(%arg0: i32) -> (i32, i32) {
    %c0_i32 = arith.constant 0 : i32
    %c0_i32_0 = arith.constant 0 : i32
    %c0_i32_1 = arith.constant 0 : i32
    return %c0_i32, %c0_i32_0 : i32, i32
  }
  func.func @transform_5(%arg0: i32) -> (i32, i32) {
    %c0_i32 = arith.constant 0 : i32
    %c0_i32_0 = arith.constant 0 : i32
    %c0_i32_1 = arith.constant 0 : i32
    return %c0_i32, %c0_i32_0 : i32, i32
  }
  func.func @transform_6(%arg0: i32) -> (i32, i32) {
    %c0_i32 = arith.constant 0 : i32
    %c0_i32_0 = arith.constant 0 : i32
    %c0_i32_1 = arith.constant 0 : i32
    return %c0_i32, %c0_i32_0 : i32, i32
  }
  func.func @transform_7(%arg0: i32) -> (i32, i32) {
    %c0_i32 = arith.constant 0 : i32
    %c0_i32_0 = arith.constant 0 : i32
    %c0_i32_1 = arith.constant 0 : i32
    return %c0_i32, %c0_i32_0 : i32, i32
  }
  func.func @transform_8(%arg0: i32) -> (i32, i32) {
    %c0_i32 = arith.constant 0 : i32
    %c0_i32_0 = arith.constant 0 : i32
    %c0_i32_1 = arith.constant 0 : i32
    return %c0_i32, %c0_i32_0 : i32, i32
  }
  func.func @transform_9(%arg0: i32) -> (i32, i32) {
    %c0_i32 = arith.constant 0 : i32
    %c0_i32_0 = arith.constant 0 : i32
    %c0_i32_1 = arith.constant 0 : i32
    return %c0_i32, %c0_i32_0 : i32, i32
  }
  func.func @transform_10(%arg0: i32) -> (i32, i32) {
    %c0_i32 = arith.constant 0 : i32
    %c0_i32_0 = arith.constant 0 : i32
    %c0_i32_1 = arith.constant 0 : i32
    return %c0_i32, %c0_i32_0 : i32, i32
  }
  func.func @transform_11(%arg0: i32) -> (i32, i32) {
    %c0_i32 = arith.constant 0 : i32
    %c0_i32_0 = arith.constant 0 : i32
    %c0_i32_1 = arith.constant 0 : i32
    return %c0_i32, %c0_i32_0 : i32, i32
  }
  func.func @transform_12(%arg0: i32) -> (i32, i32) {
    %c0_i32 = arith.constant 0 : i32
    %c0_i32_0 = arith.constant 0 : i32
    %c0_i32_1 = arith.constant 0 : i32
    return %c0_i32, %c0_i32_0 : i32, i32
  }
  func.func @transform_13(%arg0: i32) -> (i32, i32) {
    %c0_i32 = arith.constant 0 : i32
    %c0_i32_0 = arith.constant 0 : i32
    %c0_i32_1 = arith.constant 0 : i32
    return %c0_i32, %c0_i32_0 : i32, i32
  }
  func.func @transform_14(%arg0: i32) -> (i32, i32) {
    %c0_i32 = arith.constant 0 : i32
    %c0_i32_0 = arith.constant 0 : i32
    %c0_i32_1 = arith.constant 0 : i32
    return %c0_i32, %c0_i32_0 : i32, i32
  }
  func.func @transform_15(%arg0: i32) -> (i32, i32) {
    %c0_i32 = arith.constant 0 : i32
    %c0_i32_0 = arith.constant 0 : i32
    %c0_i32_1 = arith.constant 0 : i32
    return %c0_i32, %c0_i32_0 : i32, i32
  }
  func.func @transform_16(%arg0: i32) -> (i32, i32) {
    %c0_i32 = arith.constant 0 : i32
    %c0_i32_0 = arith.constant 0 : i32
    %c0_i32_1 = arith.constant 0 : i32
    return %c0_i32, %c0_i32_0 : i32, i32
  }
}

</mosaic_0001>

<bundles_post_ra>
// kernel: simsiam_forward.4
= control target key start
LH: loop header
LB: loop body
LE: loop exit
PB: predicated region body
PF: predicated region fallthrough
CT: control target
= control target key end

     0   :  { %s1048_s30 = smov 0   ;;  %s1120_s0 = inlined_call_operand.vmem [shape: bf16[2,72,128], index: 0, kind: input, shape index: {}]   ;;  %s1121_s1 = inlined_call_operand.vmem [shape: bf16[2,72,128], index: 1, kind: input, shape index: {}]   ;;  %s1122_s2 = inlined_call_operand.vmem [shape: bf16[2,16,72], index: 2, kind: input, shape index: {}]   ;;  %s1123_s3 = inlined_call_operand.vmem [shape: f32[2,16,128], index: 3, kind: input, shape index: {}]   ;;  %s1124_s4 = inlined_call_operand.vmem [shape: f32[2,16,128], index: 4, kind: input, shape index: {}]   ;;  %s1125_s5 = inlined_call_operand.vmem [shape: bf16[16,72], index: 5, kind: input, shape index: {}]   ;;  %s1126_s6 = inlined_call_operand.vmem [shape: f32[16,1], index: 6, kind: input, shape index: {}]   ;;  %s1127_s7 = inlined_call_operand.vmem [shape: f32[2,1,128], index: 7, kind: output, shape index: {0}]   ;;  %s1128_s8 = inlined_call_operand.vmem [shape: f32[2,1,128], index: 8, kind: output, shape index: {1}]   ;;  %s1129_s9 = inlined_call_operand.vmem [shape: f32[2,1,128], index: 9, kind: output, shape index: {2}]  }
   0x1 LB: > { %s876_s10 = sadd.s32 4294967295, %s993_s30   ;;  %p880_p0 = scmp.ge.s32.totalorder %s993_s30, 1  ;;  %s993_s30 = sphi %s1048_s30, %s20_s30  }
   0x2   : > { %p332_p1 = scmp.lt.s32.totalorder %s993_s30, 3 }
   0x4   : > { %p333_p2 = pnand %p880_p0, %p332_p1 }
   0x5   : > { %p392_p3 = scmp.lt.s32.totalorder (!%p333_p2), %s876_s10, 1 }
   0x6   : > { %336 = sbr.rel (%p333_p2) target bundleno = 292 (0x124), region = 48 }
   0xb   : > { %v995_v0 = vmov 0.0   ;;  %v438_v1 = vld [vmem:[%s1126_s6] sm:$0xff]  ;;  %s1131_s10 = smov (!%p392_p3, %s876_s10), 1  ;;  %vm996_vm0 = vmmov 0   ;;  %v997_v2 = vmov 0   ;;  %v439_v3 = vld [vmem:[%s1126_s6 + $0x8] sm:$0xff] }
   0xc   : > { %920 = vmatprep.subr.bf16.mxu0 %v995_v0  ;;  %934 = vmatprep.subr.bf16.mxu1 %v995_v0  ;;  %s948_s13 = smul.u32 36, %s1131_s10  ;;  %s905_s14 = sshll.u32 %s1131_s10, 3  ;;  %vm486_vm1 = vcmask 1043456   ;;  %v971_v16 = vld [vmem:[%s1125_s5] sm:$0xff]   ;;  %vm482_vm2 = vcmask 588800  }
   0xd   : > { %930 = vmatprep.mubr.msk.bf16.mxu0 %vm996_vm0, %v995_v0  ;;  %944 = vmatprep.mubr.msk.bf16.mxu1 %vm996_vm0, %v995_v0  ;;  %s1066_s17 = scalar_lea.vmem %s1122_s2, %s905_s14  ;;  %s906_s28 = sshll.u32 %s1131_s10, 4 }
   0xe   : > { %960 = vset.pattern.permute.xlu0 %v997_v2  ;;  %s396_s22 = scalar_lea.vmem %s1120_s0, %s948_s13  ;;  %s401_s25 = scalar_lea.vmem %s1121_s1, %s948_s13  ;;  %v972_v17 = vld [vmem:[%s1066_s17] sm:$0xff]  }
   0xf   : > { %442 = vperm.xlu0 %960, %v438_v1   ;;  %v961_v4 = vld [vmem:[%s396_s22 + $0x20] ss:$0 sps:$4 sm:$0xff]   ;;  %v963_v8 = vld [vmem:[%s396_s22 + $0x18] sm:$0xff]   ;;  %v965_v10 = vld [vmem:[%s396_s22 + $0x10] sm:$0xff]   ;;  %s416_s12 = scalar_lea.vmem %s1124_s4, %s906_s28  ;;  %s411_s15 = scalar_lea.vmem %s1123_s3, %s906_s28 }
  0x10   : > { %v962_v5 = vld [vmem:[%s401_s25 + $0x20] ss:$0 sps:$4 sm:$0xff]   ;;  %v488_v6 = vsel %vm486_vm1, %v961_v4, 0  ;;  %v964_v9 = vld [vmem:[%s401_s25 + $0x18] sm:$0xff]   ;;  %v966_v11 = vld [vmem:[%s401_s25 + $0x10] sm:$0xff]   ;;  %s425_s18 = scalar_lea.vmem %s1129_s9, %s1131_s10  ;;  %s419_s21 = scalar_lea.vmem %s1127_s7, %s1131_s10 }
  0x11   : > { %921 = vmatpush3.bf16.msra.mxu0 %v488_v6  ;;  %v578_v7 = vsel %vm486_vm1, %v962_v5, 0  ;;  %v967_v12 = vld [vmem:[%s396_s22 + $0x8] sm:$0xff]   ;;  %v969_v14 = vld [vmem:[%s396_s22] sm:$0xff]   ;;  %s422_s24 = scalar_lea.vmem %s1128_s8, %s1131_s10 }
  0x12   : > { %935 = vmatpush3.bf16.msra.mxu1 %v578_v7  ;;  %922 = vmatprep.subr.bf16.mxu0 %v995_v0  ;;  %v968_v13 = vld [vmem:[%s401_s25 + $0x8] sm:$0xff]   ;;  %v970_v15 = vld [vmem:[%s401_s25] sm:$0xff]  }
  0x13   : > { %447 = vperm.xlu0 %960, %v439_v3   ;;  %936 = vmatprep.subr.bf16.mxu1 %v995_v0  ;;  %v624_v18 = vld [vmem:[%s416_s12 + $0x8] sm:$0xff]  ;;  %v1088_v19 = vld [vmem:[%s416_s12] sm:$0xff] }
  0x14   : > { %v1090_v20 = vld [vmem:[%s411_s15 + $0x8] sm:$0xff]  ;;  %v710_v21 = vmul.f32 %v1088_v19, %v1088_v19  ;;  %v711_v22 = vmul.f32 %v624_v18, %v624_v18  ;;  %v1094_v23 = vld [vmem:[%s411_s15] sm:$0xff] }
  0x15   : > { %923 = vmatpush3.bf16.msra.mxu0 %v963_v8  ;;  %v650_v24 = vmul.f32 %v1094_v23, %v1094_v23  ;;  %v651_v25 = vmul.f32 %v1090_v20, %v1090_v20 }
  0x16   : > { %937 = vmatpush3.bf16.msra.mxu1 %v964_v9  ;;  %924 = vmatprep.subr.bf16.mxu0 %v995_v0  ;;  %v712_v26 = vadd.f32 %v711_v22, %v710_v21 }
  0x17   : > { %938 = vmatprep.subr.bf16.mxu1 %v995_v0  ;;  %v652_v27 = vadd.f32 %v651_v25, %v650_v24 }
  0x18   : > { %v713_v28 = vrot.slane %v712_v26, 4 }
  0x19   : > { %925 = vmatpush3.bf16.msra.mxu0 %v965_v10  ;;  %v653_v29 = vrot.slane %v652_v27, 4 }
  0x1a   : > { %939 = vmatpush3.bf16.msra.mxu1 %v966_v11  ;;  %926 = vmatprep.subr.bf16.mxu0 %v995_v0  ;;  %v714_v30 = vadd.f32 %v713_v28, %v712_v26 }
  0x1b   : > { %940 = vmatprep.subr.bf16.mxu1 %v995_v0  ;;  %v654_v31 = vadd.f32 %v653_v29, %v652_v27 }
  0x1c   : > { %v715_v32 = vrot.slane %v714_v30, 2 }
  0x1d   : > { %927 = vmatpush3.bf16.msra.mxu0 %v967_v12  ;;  %v655_v34 = vrot.slane %v654_v31, 2 }
  0x1e   : > { %941 = vmatpush3.bf16.msra.mxu1 %v968_v13  ;;  %928 = vmatprep.subr.bf16.mxu0 %v995_v0  ;;  %v716_v36 = vadd.f32 %v715_v32, %v714_v30 }
  0x1f   : > { %942 = vmatprep.subr.bf16.mxu1 %v995_v0  ;;  %v656_v39 = vadd.f32 %v655_v34, %v654_v31 }
  0x20   : > { %v717_v45 = vrot.slane %v716_v36, 1 }
  0x21   : > { %929 = vmatpush3.bf16.msra.mxu0 %v969_v14  ;;  %v657_v49 = vrot.slane %v656_v39, 1 }
  0x22   : > { %943 = vmatpush3.bf16.msra.mxu1 %v970_v15  ;;  %v718_v55 = vadd.f32 %v717_v45, %v716_v36 }
  0x23   : > { %v658_v58 = vadd.f32 %v657_v49, %v656_v39 }
  0x24   : > { %931 = vmatmul.mubr.msk.bf16.vlgmr.msra.gmra.mxu0 %vm482_vm2, %v971_v16  ;;  %973 = vrsqrt.f32 %v718_v55  ;;  %vm721_vm3 = vcmp.eq.f32.partialorder %v718_v55, inf  ;;  %v724_v22 = vand.u32 2147483648, %v718_v55  ;;  %vm723_vm5 = vcmp.eq.f32.partialorder %v718_v55, 0.0 }
  0x25   : > { %945 = vmatmul.mubr.msk.bf16.vlgmr.msra.gmra.mxu1 %vm482_vm2, %v972_v17  ;;  %975 = vrsqrt.f32 %v658_v58  ;;  %vm661_vm4 = vcmp.eq.f32.partialorder %v658_v58, inf  ;;  %v664_v26 = vand.u32 2147483648, %v658_v58  ;;  %vm663_vm6 = vcmp.eq.f32.partialorder %v658_v58, 0.0 }
  0x31   : > { %v974_v8 = vpop.eup %973 }
  0x32   : > { %v976_v9 = vpop.eup %975  ;;  %v720_v10 = vmul.f32 %v974_v8, %v718_v55 }
  0x33   : > { %v660_v13 = vmul.f32 %v976_v9, %v658_v58 }
  0x34   : > { %v722_v21 = vsel %vm721_vm3, %v718_v55, %v720_v10 }
  0x35   : > { %v725_v29 = vsel %vm723_vm5, %v724_v22, %v722_v21 }
  0x8a   : > { %v443_v33 = vpop.permute.xlu0 %442 }
  0x8e   : > { %v448_v42 = vpop.permute.xlu0 %447 }
  0xe4   : > { %v524_v35 = vpop.f32.mrf.mxu0 }
  0xe5   : > { %v614_v37 = vpop.f32.mrf.mxu1  ;;  %v525_v40 = vadd.f32 %v524_v35, %v443_v33 }
  0xe6   : > { %v932_v38 = vpop.f32.mrf.mxu0  ;;  %v615_v43 = vadd.f32 %v614_v37, %v443_v33 }
  0xe7   : > { %v946_v41 = vpop.f32.mrf.mxu1  ;;  %v634_v51 = vmul.f32 %v525_v40, %v525_v40  ;;  %v701_v15 = vmul.f32 %v1088_v19, %v525_v40  ;;  %v625_v16 = vmul.f32 %v1094_v23, %v525_v40 }
  0xe8   : > { %v527_v44 = vpop.f32.mrf.mxu0  ;;  %v680_v54 = vmul.f32 %v615_v43, %v615_v43  ;;  %v671_v17 = vmul.f32 %v1094_v23, %v615_v43 }
  0xe9   : > { %v528_v46 = vadd.f32 %v527_v44, %v448_v42  ;;  %v617_v47 = vpop.f32.mrf.mxu1 }
  0xea   : > { %v618_v48 = vadd.f32 %v617_v47, %v448_v42  ;;  %v933_v50 = vpop.f32.mrf.mxu0 }
  0xeb   : > { %v635_v52 = vmul.f32 %v528_v46, %v528_v46  ;;  %v947_v53 = vpop.f32.mrf.mxu1  ;;  %v702_v11 = vmul.f32 %v624_v18, %v528_v46  ;;  %v626_v12 = vmul.f32 %v1090_v20, %v528_v46  ;;  %v662_v18 = vsel %vm661_vm4, %v658_v58, %v660_v13 }
  0xec   : > { %v681_v56 = vmul.f32 %v618_v48, %v618_v48  ;;  %v672_v14 = vmul.f32 %v1090_v20, %v618_v48  ;;  %v665_v32 = vsel %vm663_vm6, %v664_v26, %v662_v18 }
  0xed   : > { %v636_v57 = vadd.f32 %v635_v52, %v634_v51  ;;  %v703_v24 = vadd.f32 %v702_v11, %v701_v15  ;;  %v627_v25 = vadd.f32 %v626_v12, %v625_v16 }
  0xee   : > { %v682_v59 = vadd.f32 %v681_v56, %v680_v54  ;;  %v673_v27 = vadd.f32 %v672_v14, %v671_v17 }
  0xef   : > { %v637_v60 = vrot.slane %v636_v57, 4  ;;  %v704_v31 = vrot.slane %v703_v24, 4  ;;  %v628_v19 = vrot.slane %v627_v25, 4 }
  0xf0   : > { %v683_v61 = vrot.slane %v682_v59, 4  ;;  %v674_v34 = vrot.slane %v673_v27, 4 }
  0xf1   : > { %v638_v62 = vadd.f32 %v637_v60, %v636_v57  ;;  %v705_v39 = vadd.f32 %v704_v31, %v703_v24  ;;  %v629_v43 = vadd.f32 %v628_v19, %v627_v25 }
  0xf2   : > { %v684_v63 = vadd.f32 %v683_v61, %v682_v59  ;;  %v675_v47 = vadd.f32 %v674_v34, %v673_v27 }
  0xf3   : > { %v639_v0 = vrot.slane %v638_v62, 2  ;;  %v706_v49 = vrot.slane %v705_v39, 2  ;;  %v630_v50 = vrot.slane %v629_v43, 2 }
  0xf4   : > { %v685_v1 = vrot.slane %v684_v63, 2  ;;  %v676_v51 = vrot.slane %v675_v47, 2 }
  0xf5   : > { %v640_v2 = vadd.f32 %v639_v0, %v638_v62  ;;  %v707_v52 = vadd.f32 %v706_v49, %v705_v39  ;;  %v631_v53 = vadd.f32 %v630_v50, %v629_v43 }
  0xf6   : > { %v686_v3 = vadd.f32 %v685_v1, %v684_v63  ;;  %v677_v54 = vadd.f32 %v676_v51, %v675_v47 }
  0xf7   : > { %v641_v4 = vrot.slane %v640_v2, 1  ;;  %v708_v55 = vrot.slane %v707_v52, 1  ;;  %v632_v56 = vrot.slane %v631_v53, 1 }
  0xf8   : > { %v687_v5 = vrot.slane %v686_v3, 1  ;;  %v678_v57 = vrot.slane %v677_v54, 1 }
  0xf9   : > { %v642_v6 = vadd.f32 %v641_v4, %v640_v2  ;;  %v709_v58 = vadd.f32 %v708_v55, %v707_v52  ;;  %v633_v60 = vadd.f32 %v632_v56, %v631_v53 }
  0xfa   : > { %v688_v7 = vadd.f32 %v687_v5, %v686_v3  ;;  %v679_v63 = vadd.f32 %v678_v57, %v677_v54 }
  0xfb   : > { %977 = vrsqrt.f32 %v642_v6  ;;  %vm645_vm7 = vcmp.eq.f32.partialorder %v642_v6, inf  ;;  %v648_v33 = vand.u32 2147483648, %v642_v6  ;;  %vm647_vm8 = vcmp.eq.f32.partialorder %v642_v6, 0.0 }
  0xfc   : > { %979 = vrsqrt.f32 %v688_v7  ;;  %vm691_vm9 = vcmp.eq.f32.partialorder %v688_v7, inf  ;;  %v694_v36 = vand.u32 2147483648, %v688_v7  ;;  %vm693_vm10 = vcmp.eq.f32.partialorder %v688_v7, 0.0 }
 0x108   : > { %v978_v28 = vpop.eup %977 }
 0x109   : > { %v980_v30 = vpop.eup %979  ;;  %v644_v20 = vmul.f32 %v978_v28, %v642_v6 }
 0x10a   : > { %v690_v23 = vmul.f32 %v980_v30, %v688_v7 }
 0x10b   : > { %v646_v35 = vsel %vm645_vm7, %v642_v6, %v644_v20 }
 0x10c   : > { %v649_v37 = vsel %vm647_vm8, %v648_v33, %v646_v35  ;;  %v692_v38 = vsel %vm691_vm9, %v688_v7, %v690_v23 }
 0x10d   : > { %v726_v40 = vmul.f32 %v725_v29, %v649_v37  ;;  %v666_v41 = vmul.f32 %v665_v32, %v649_v37  ;;  %v695_v42 = vsel %vm693_vm10, %v694_v36, %v692_v38 }
 0x10e   : > { %v696_v44 = vmul.f32 %v695_v42, %v665_v32 }
 0x10f   : > { %v727_v45 = vmax.f32 %v726_v40, 1e-08  ;;  %v667_v46 = vmax.f32 %v666_v41, 1e-08 }
 0x110   : > { %v697_v48 = vmax.f32 %v696_v44, 1e-08 }
 0x111   : > { %981 = vrcp.f32 %v727_v45 }
 0x112   : > { %983 = vrcp.f32 %v667_v46 }
 0x113   : > { %985 = vrcp.f32 %v697_v48 }
 0x11e   : > { %v982_v59 = vpop.eup %981 }
 0x11f   : > { %v984_v61 = vpop.eup %983  ;;  %v729_v62 = vmul.f32 %v982_v59, %v709_v58 }
 0x120   : > { %v986_v0 = vpop.eup %985  ;;  %v669_v1 = vmul.f32 %v984_v61, %v633_v60 }
 0x121   : > { %730 = vst [vmem:[%s425_s18] sm:$0x1] %v729_v62  ;;  %v699_v2 = vmul.f32 %v986_v0, %v679_v63 }
 0x122   : > { %670 = vst [vmem:[%s419_s21] sm:$0x1] %v669_v1 }
 0x123   : > { %700 = vst [vmem:[%s422_s24] sm:$0x1] %v699_v2 }
 0x124 PF: > { %s20_s30 = sadd.s32 1, %s993_s30  }
 0x125   : > { %p17_p4 = scmp.ge.s32.totalorder %s20_s30, 4  }
 0x127   :  { %19 = sbr.rel (!%p17_p4) target bundleno = 1 (0x1), region = 114 }

// kernel: simsiam_forward.3
= control target key start
LH: loop header
LB: loop body
LE: loop exit
PB: predicated region body
PF: predicated region fallthrough
CT: control target
= control target key end

     0   :  { %s1320_s29 = smov 0   ;;  %s1435_s0 = inlined_call_operand.vmem [shape: bf16[2,16,128], index: 0, kind: input, shape index: {}]   ;;  %s1436_s1 = inlined_call_operand.vmem [shape: bf16[2,16,16], index: 1, kind: input, shape index: {}]   ;;  %s1437_s2 = inlined_call_operand.vmem [shape: bf16[16,16], index: 2, kind: input, shape index: {}]   ;;  %s1438_s3 = inlined_call_operand.vmem [shape: f32[16,1], index: 3, kind: input, shape index: {}]   ;;  %s1439_s4 = inlined_call_operand.vmem [shape: f32[16,1], index: 4, kind: input, shape index: {}]   ;;  %s1440_s5 = inlined_call_operand.vmem [shape: bf16[16,16], index: 5, kind: input, shape index: {}]   ;;  %s1441_s6 = inlined_call_operand.vmem [shape: f32[16,1], index: 6, kind: input, shape index: {}]   ;;  %s1442_s7 = inlined_call_operand.vmem [shape: f32[16,1], index: 7, kind: input, shape index: {}]   ;;  %s1443_s8 = inlined_call_operand.vmem [shape: bf16[8,16], index: 8, kind: input, shape index: {}]   ;;  %s1444_s9 = inlined_call_operand.vmem [shape: f32[8,1], index: 9, kind: input, shape index: {}]   ;;  %s1445_s10 = inlined_call_operand.vmem [shape: f32[8,1], index: 10, kind: input, shape index: {}]   ;;  %s1446_s11 = inlined_call_operand.vmem [shape: f32[2,16,128], index: 11, kind: output, shape index: {0}]   ;;  %s1447_s12 = inlined_call_operand.vmem [shape: f32[2,16,128], index: 12, kind: output, shape index: {1}]   ;;  %s1448_s13 = inlined_call_operand.vmem [shape: f32[2,8,128], index: 13, kind: output, shape index: {2}]   ;;  %s1449_s14 = inlined_call_operand.vmem [shape: f32[2,8,128], index: 14, kind: output, shape index: {3}]  }
   0x1 LB: > { %s1131_s30 = sadd.s32 4294967295, %s1240_s29   ;;  %p1135_p0 = scmp.ge.s32.totalorder %s1240_s29, 1  ;;  %s1240_s29 = sphi %s1320_s29, %s25_s29  }
   0x2   : > { %p429_p1 = scmp.lt.s32.totalorder %s1240_s29, 3 }
   0x4   : > { %p430_p2 = pnand %p1135_p0, %p429_p1 }
   0x5   : > { %p493_p3 = scmp.lt.s32.totalorder (!%p430_p2), %s1131_s30, 1 }
   0x6   : > { %433 = sbr.rel (%p430_p2) target bundleno = 1242 (0x4da), region = 64 }
   0xb   : > { %v1242_v0 = vmov 0.0   ;;  %vm1243_vm0 = vmmov 0   ;;  %s1451_s30 = smov (!%p493_p3, %s1131_s30), 1  ;;  %v1215_v2 = vld [vmem:[%s1437_s2] sm:$0xff]   ;;  %vm537_vm1 = vcmask 130048   ;;  %v1244_v3 = vmov 0  }
   0xc   : > { %1171 = vmatprep.subr.bf16.mxu0 %v1242_v0  ;;  %1173 = vmatprep.mubr.msk.bf16.mxu0 %vm1243_vm0, %v1242_v0  ;;  %s1337_s15 = sshll.u32 %s1451_s30, 3  ;;  %v583_v9 = vld [vmem:[%s1438_s3 + $0x8] sm:$0xff]  ;;  %v584_v10 = vld [vmem:[%s1439_s4] sm:$0xff] }
   0xd   : > { %1177 = vmatprep.subr.bf16.mxu1 %v1242_v0  ;;  %1179 = vmatprep.mubr.msk.bf16.mxu1 %vm1243_vm0, %v1242_v0  ;;  %s497_s18 = scalar_lea.vmem %s1435_s0, %s1337_s15  ;;  %s502_s21 = scalar_lea.vmem %s1436_s1, %s1337_s15  ;;  %v582_v11 = vld [vmem:[%s1438_s3] sm:$0xff]  ;;  %v585_v13 = vld [vmem:[%s1439_s4 + $0x8] sm:$0xff] }
   0xe   : > { %v1214_v1 = vld [vmem:[%s497_s18] sm:$0xff]   ;;  %1213 = vset.pattern.permute.xlu1 %v1244_v3  ;;  %1212 = vset.pattern.permute.xlu0 %v1244_v3  ;;  %v693_v59 = vld [vmem:[%s1441_s6 + $0x8] sm:$0xff]  ;;  %s1159_s18 = sshll.u32 %s1451_s30, 4  ;;  %s520_s19 = scalar_lea.vmem %s1449_s14, %s1337_s15 }
   0xf   : > { %1172 = vmatpush3.bf16.msra.mxu0 %v1214_v1  ;;  %v1216_v47 = vld [vmem:[%s1440_s5] sm:$0xff]   ;;  %v695_v61 = vld [vmem:[%s1442_s7 + $0x8] sm:$0xff]  ;;  %s507_s22 = scalar_lea.vmem %s1446_s11, %s1159_s18  ;;  %s512_s24 = scalar_lea.vmem %s1447_s12, %s1159_s18 }
  0x10   : > { %1183 = vmatprep.subr.bf16.mxu0 %v1242_v0  ;;  %v1217_v48 = vld [vmem:[%s502_s21] sm:$0xff]   ;;  %s516_s23 = scalar_lea.vmem %s1448_s13, %s1337_s15 }
  0x11   : > { %v692_v60 = vld [vmem:[%s1441_s6] sm:$0xff] }
  0x12   : > { %1174 = vmatmul.mubr.msk.bf16.vlgmr.msra.gmra.mxu0 %vm537_vm1, %v1215_v2 }
  0x13   : > { %1185 = vmatprep.mubr.msk.bf16.mxu0 %vm1243_vm0, %v1242_v0 }
  0xd2   : > { %v575_v4 = vpop.f32.mrf.mxu0 }
  0xd3   : > { %586 = vadd.xlane.f32.xlu0 %v575_v4  ;;  %v590_v5 = vmul.f32 %v575_v4, %v575_v4 }
  0xd4   : > { %v1175_v6 = vpop.f32.mrf.mxu0 }
  0xd5   : > { %592 = vadd.xlane.f32.xlu1 %v590_v5 }
  0xd6   : > { %v578_v7 = vpop.f32.mrf.mxu0 }
  0xd7   : > { %588 = vadd.xlane.f32.xlu0 %v578_v7  ;;  %v591_v12 = vmul.f32 %v578_v7, %v578_v7 }
  0xd8   : > { %v1176_v8 = vpop.f32.mrf.mxu0 }
  0xe6   : > { %621 = vperm.xlu1 %1213, %v583_v9  }
  0xea   : > { %628 = vperm.xlu1 %1213, %v584_v10  }
  0xed   : > { %616 = vperm.xlu0 %1212, %v582_v11  }
 0x10e   : > { %594 = vadd.xlane.f32.xlu1 %v591_v12 }
 0x11f   : > { %633 = vperm.xlu1 %1213, %v585_v13  }
 0x15c   : > { %v587_v14 = vpop.xlane.xlu0 %586 }
 0x15d   : > { %v596_v15 = vmul.f32 0.0078125, %v587_v14 }
 0x15e   : > { %v593_v16 = vpop.xlane.xlu1 %592 }
 0x15f   : > { %v600_v17 = vmul.f32 %v596_v15, %v596_v15  ;;  %v598_v18 = vmul.f32 0.0078125, %v593_v16  ;;  %v606_v33 = vsub.f32 %v575_v4, %v596_v15 }
 0x160   : > { %v589_v22 = vpop.xlane.xlu0 %588 }
 0x161   : > { %v602_v19 = vsub.f32 %v598_v18, %v600_v17  ;;  %v597_v25 = vmul.f32 0.0078125, %v589_v22 }
 0x162   : > { %v622_v20 = vpop.permute.xlu1 %621 }
 0x163   : > { %v604_v21 = vmax.f32 %v602_v19, 0.0  ;;  %v601_v27 = vmul.f32 %v597_v25, %v597_v25  ;;  %v607_v36 = vsub.f32 %v578_v7, %v597_v25 }
 0x165   : > { %v608_v24 = vadd.f32 1e-05, %v604_v21 }
 0x166   : > { %v629_v23 = vpop.permute.xlu1 %628 }
 0x167   : > { %1218 = vrsqrt.f32 %v608_v24 }
 0x168   : > { %v617_v35 = vpop.permute.xlu0 %616 }
 0x174   : > { %v1219_v32 = vpop.eup %1218 }
 0x175   : > { %v612_v34 = vmul.f32 %v1219_v32, %v606_v33 }
 0x177   : > { %v624_v37 = vmul.f32 %v617_v35, %v612_v34 }
 0x179   : > { %v636_v40 = vadd.f32 %v629_v23, %v624_v37 }
 0x17b   : > { %v638_v44 = vmax.f32 %v636_v40, 0.0 }
 0x197   : > { %v595_v26 = vpop.xlane.xlu1 %594 }
 0x198   : > { %v599_v28 = vmul.f32 0.0078125, %v595_v26 }
 0x19a   : > { %v603_v29 = vsub.f32 %v599_v28, %v601_v27 }
 0x19b   : > { %v634_v42 = vpop.permute.xlu1 %633 }
 0x19c   : > { %v605_v30 = vmax.f32 %v603_v29, 0.0 }
 0x19e   : > { %v609_v31 = vadd.f32 1e-05, %v605_v30 }
 0x1a0   : > { %1220 = vrsqrt.f32 %v609_v31 }
 0x1ad   : > { %v1221_v38 = vpop.eup %1220 }
 0x1ae   : > { %v613_v39 = vmul.f32 %v1221_v38, %v607_v36 }
 0x1b0   : > { %v625_v41 = vmul.f32 %v622_v20, %v613_v39 }
 0x1b2   : > { %v637_v43 = vadd.f32 %v634_v42, %v625_v41 }
 0x1b4   : > { %v639_v45 = vmax.f32 %v637_v43, 0.0 }
 0x1b6   : > { %v640_v46 = vpack.c.bf16 %v639_v45, %v638_v44 }
 0x1b8   : > { %1178 = vmatpush3.bf16.msra.mxu1 %v640_v46  ;;  %1184 = vmatpush3.bf16.msra.mxu0 %v640_v46 }
 0x1b9   : > { %1189 = vmatprep.subr.bf16.mxu1 %v1242_v0  ;;  %1195 = vmatprep.subr.bf16.mxu0 %v1242_v0 }
 0x1bb   : > { %1180 = vmatmul.mubr.msk.bf16.vlgmr.msra.gmra.mxu1 %vm537_vm1, %v1216_v47  ;;  %1186 = vmatmul.mubr.msk.bf16.vlgmr.msra.gmra.mxu0 %vm537_vm1, %v1217_v48 }
 0x1bc   : > { %1191 = vmatprep.mubr.msk.bf16.mxu1 %vm1243_vm0, %v1242_v0  ;;  %1197 = vmatprep.mubr.msk.bf16.mxu0 %vm1243_vm0, %v1242_v0  ;;  %v694_v0 = vld [vmem:[%s1442_s7] sm:$0xff] }
 0x27b   : > { %v685_v49 = vpop.f32.mrf.mxu1  ;;  %v792_v50 = vpop.f32.mrf.mxu0 }
 0x27c   : > { %696 = vadd.xlane.f32.xlu1 %v685_v49  ;;  %v803_v51 = vmul.f32 %v792_v50, %v792_v50  ;;  %v700_v58 = vmul.f32 %v685_v49, %v685_v49 }
 0x27d   : > { %v1181_v52 = vpop.f32.mrf.mxu1  ;;  %v1187_v53 = vpop.f32.mrf.mxu0 }
 0x27e   : > { %805 = vadd.xlane.f32.xlu0 %v803_v51 }
 0x27f   : > { %v1382_v54 = vpop.f32.mrf.mxu1  ;;  %v1384_v55 = vpop.f32.mrf.mxu0 }
 0x280   : > { %799 = vadd.xlane.f32.xlu1 %v792_v50  ;;  %v701_v62 = vmul.f32 %v1382_v54, %v1382_v54  ;;  %v804_v63 = vmul.f32 %v1384_v55, %v1384_v55 }
 0x281   : > { %v1182_v56 = vpop.f32.mrf.mxu1  ;;  %v1188_v57 = vpop.f32.mrf.mxu0 }
 0x282   : > { %698 = vadd.xlane.f32.xlu0 %v1382_v54 }
 0x284   : > { %702 = vadd.xlane.f32.xlu1 %v700_v58 }
 0x295   : > { %731 = vperm.xlu1 %1213, %v693_v59  }
 0x298   : > { %726 = vperm.xlu0 %1212, %v692_v60   ;;  %v831_v60 = vld [vmem:[%s1443_s8] sm:$0xf] }
 0x29c   : > { %743 = vperm.xlu0 %1212, %v695_v61  }
 0x2b9   : > { %801 = vadd.xlane.f32.xlu1 %v1384_v55 }
 0x2bd   : > { %704 = vadd.xlane.f32.xlu1 %v701_v62 }
 0x2c1   : > { %807 = vadd.xlane.f32.xlu1 %v804_v63 }
 0x2d2   : > { %738 = vperm.xlu1 %1213, %v694_v0  }
 0x305   : > { %v697_v1 = vpop.xlane.xlu1 %696 }
 0x306   : > { %v706_v5 = vmul.f32 0.0078125, %v697_v1 }
 0x307   : > { %v806_v6 = vpop.xlane.xlu0 %805 }
 0x308   : > { %v811_v7 = vmul.f32 0.0078125, %v806_v6  ;;  %v710_v10 = vmul.f32 %v706_v5, %v706_v5  ;;  %v716_v23 = vsub.f32 %v685_v49, %v706_v5  ;;  %v877_v6 = vld [vmem:[%s1445_s10] sm:$0xff] }
 0x309   : > { %v800_v2 = vpop.xlane.xlu1 %799 }
 0x30a   : > { %v809_v3 = vmul.f32 0.0078125, %v800_v2 }
 0x30b   : > { %v699_v18 = vpop.xlane.xlu0 %698 }
 0x30c   : > { %v813_v8 = vmul.f32 %v809_v3, %v809_v3  ;;  %v707_v20 = vmul.f32 0.0078125, %v699_v18  ;;  %v819_v25 = vsub.f32 %v792_v50, %v809_v3 }
 0x30d   : > { %v703_v4 = vpop.xlane.xlu1 %702 }
 0x30e   : > { %v708_v9 = vmul.f32 0.0078125, %v703_v4  ;;  %v815_v11 = vsub.f32 %v811_v7, %v813_v8  ;;  %v711_v26 = vmul.f32 %v707_v20, %v707_v20  ;;  %v717_v46 = vsub.f32 %v1382_v54, %v707_v20  ;;  %v876_v7 = vld [vmem:[%s1444_s9] sm:$0xff] }
 0x310   : > { %v712_v12 = vsub.f32 %v708_v9, %v710_v10  ;;  %v817_v13 = vmax.f32 %v815_v11, 0.0 }
 0x311   : > { %v732_v17 = vpop.permute.xlu1 %731 }
 0x312   : > { %v714_v14 = vmax.f32 %v712_v12, 0.0  ;;  %v821_v15 = vadd.f32 1e-05, %v817_v13 }
 0x313   : > { %v727_v36 = vpop.permute.xlu0 %726 }
 0x314   : > { %v718_v16 = vadd.f32 1e-05, %v714_v14  ;;  %1222 = vrsqrt.f32 %v821_v15 }
 0x316   : > { %1224 = vrsqrt.f32 %v718_v16 }
 0x317   : > { %v744_v52 = vpop.permute.xlu0 %743 }
 0x321   : > { %v1223_v21 = vpop.eup %1222 }
 0x322   : > { %v825_v30 = vmul.f32 %v1223_v21, %v819_v25 }
 0x323   : > { %v1225_v22 = vpop.eup %1224 }
 0x324   : > { %v722_v29 = vmul.f32 %v1225_v22, %v716_v23  ;;  %v827_v38 = vmul.f32 %v825_v30, %v727_v36 }
 0x326   : > { %v734_v37 = vmul.f32 %v727_v36, %v722_v29 }
 0x342   : > { %v802_v19 = vpop.xlane.xlu1 %801 }
 0x343   : > { %v810_v27 = vmul.f32 0.0078125, %v802_v19 }
 0x345   : > { %v814_v33 = vmul.f32 %v810_v27, %v810_v27  ;;  %v820_v49 = vsub.f32 %v1384_v55, %v810_v27 }
 0x346   : > { %v705_v24 = vpop.xlane.xlu1 %704 }
 0x347   : > { %v709_v28 = vmul.f32 0.0078125, %v705_v24 }
 0x349   : > { %v713_v31 = vsub.f32 %v709_v28, %v711_v26 }
 0x34a   : > { %v808_v32 = vpop.xlane.xlu1 %807 }
 0x34b   : > { %v715_v34 = vmax.f32 %v713_v31, 0.0  ;;  %v812_v35 = vmul.f32 0.0078125, %v808_v32 }
 0x34d   : > { %v719_v39 = vadd.f32 1e-05, %v715_v34  ;;  %v816_v40 = vsub.f32 %v812_v35, %v814_v33 }
 0x34e   : > { %v739_v41 = vpop.permute.xlu1 %738 }
 0x34f   : > { %1226 = vrsqrt.f32 %v719_v39  ;;  %v818_v42 = vmax.f32 %v816_v40, 0.0  ;;  %v746_v43 = vadd.f32 %v739_v41, %v734_v37  ;;  %v829_v44 = vadd.f32 %v827_v38, %v739_v41 }
 0x351   : > { %v822_v45 = vadd.f32 1e-05, %v818_v42  ;;  %963 = vst [vmem:[%s507_s22] sm:$0xff] %v746_v43  ;;  %965 = vst [vmem:[%s512_s24] sm:$0xff] %v829_v44 }
 0x353   : > { %1228 = vrsqrt.f32 %v822_v45 }
 0x35c   : > { %v1227_v47 = vpop.eup %1226 }
 0x35d   : > { %v723_v48 = vmul.f32 %v1227_v47, %v717_v46 }
 0x35f   : > { %v735_v50 = vmul.f32 %v732_v17, %v723_v48 }
 0x360   : > { %v1229_v51 = vpop.eup %1228 }
 0x361   : > { %v747_v53 = vadd.f32 %v744_v52, %v735_v50  ;;  %v826_v56 = vmul.f32 %v1229_v51, %v820_v49 }
 0x363   : > { %v828_v57 = vmul.f32 %v826_v56, %v732_v17  ;;  %964 = vst [vmem:[%s507_s22 + $0x8] sm:$0xff] %v747_v53  ;;  %v832_v58 = vpack.c.bf16 %v747_v53, %v746_v43 }
 0x365   : > { %v830_v59 = vadd.f32 %v828_v57, %v744_v52  ;;  %1190 = vmatpush3.bf16.msra.mxu1 %v832_v58 }
 0x367   : > { %966 = vst [vmem:[%s512_s24 + $0x8] sm:$0xff] %v830_v59  ;;  %v905_v54 = vpack.c.bf16 %v830_v59, %v829_v44 }
 0x368   : > { %1192 = vmatmul.mubr.msk.bf16.vlgmr.msra.gmra.mxu1 %vm537_vm1, %v831_v60 }
 0x369   : > { %1196 = vmatpush3.bf16.msra.mxu0 %v905_v54 }
 0x36c   : > { %1198 = vmatmul.mubr.msk.bf16.vlgmr.msra.gmra.mxu0 %vm537_vm1, %v831_v60 }
 0x428   : > { %v870_v55 = vpop.f32.mrf.mxu1 }
 0x429   : > { %878 = vadd.xlane.f32.xlu1 %v870_v55  ;;  %v880_v3 = vmul.f32 %v870_v55, %v870_v55 }
 0x42a   : > { %v1193_v61 = vpop.f32.mrf.mxu1 }
 0x42c   : > { %v940_v62 = vpop.f32.mrf.mxu0  ;;  %v873_v63 = vpop.f32.mrf.mxu1 }
 0x42d   : > { %946 = vadd.xlane.f32.xlu0 %v940_v62  ;;  %v948_v0 = vmul.f32 %v940_v62, %v940_v62 }
 0x42e   : > { %v1199_v1 = vpop.f32.mrf.mxu0  ;;  %v1194_v2 = vpop.f32.mrf.mxu1 }
 0x42f   : > { %949 = vadd.xlane.f32.xlu1 %v948_v0 }
 0x430   : > { %v943_v4 = vpop.f32.mrf.mxu0 }
 0x431   : > { %881 = vadd.xlane.f32.xlu0 %v880_v3 }
 0x432   : > { %v1200_v5 = vpop.f32.mrf.mxu0 }
 0x440   : > { %900 = vperm.xlu1 %1213, %v877_v6  }
 0x447   : > { %894 = vperm.xlu0 %1212, %v876_v7  }
 0x4b2   : > { %v879_v8 = vpop.xlane.xlu1 %878 }
 0x4b3   : > { %v883_v12 = vmul.f32 0.0078125, %v879_v8 }
 0x4b5   : > { %v885_v16 = vmul.f32 %v883_v12, %v883_v12  ;;  %v888_v26 = vsub.f32 %v870_v55, %v883_v12 }
 0x4b6   : > { %v947_v9 = vpop.xlane.xlu0 %946 }
 0x4b7   : > { %v951_v10 = vmul.f32 0.0078125, %v947_v9 }
 0x4b8   : > { %v950_v11 = vpop.xlane.xlu1 %949 }
 0x4b9   : > { %v953_v13 = vmul.f32 %v951_v10, %v951_v10  ;;  %v952_v14 = vmul.f32 0.0078125, %v950_v11  ;;  %v956_v24 = vsub.f32 %v940_v62, %v951_v10 }
 0x4ba   : > { %v882_v15 = vpop.xlane.xlu0 %881 }
 0x4bb   : > { %v954_v17 = vsub.f32 %v952_v14, %v953_v13  ;;  %v884_v18 = vmul.f32 0.0078125, %v882_v15 }
 0x4bc   : > { %v901_v32 = vpop.permute.xlu1 %900 }
 0x4bd   : > { %v955_v19 = vmax.f32 %v954_v17, 0.0  ;;  %v886_v20 = vsub.f32 %v884_v18, %v885_v16 }
 0x4bf   : > { %v957_v21 = vadd.f32 1e-05, %v955_v19  ;;  %v887_v22 = vmax.f32 %v886_v20, 0.0 }
 0x4c1   : > { %1230 = vrsqrt.f32 %v957_v21  ;;  %v889_v23 = vadd.f32 1e-05, %v887_v22 }
 0x4c2   : > { %v895_v29 = vpop.permute.xlu0 %894 }
 0x4c3   : > { %1232 = vrsqrt.f32 %v889_v23 }
 0x4ce   : > { %v1231_v25 = vpop.eup %1230 }
 0x4cf   : > { %v959_v27 = vmul.f32 %v1231_v25, %v956_v24 }
 0x4d0   : > { %v1233_v28 = vpop.eup %1232 }
 0x4d1   : > { %v891_v30 = vmul.f32 %v1233_v28, %v888_v26  ;;  %v960_v31 = vmul.f32 %v959_v27, %v895_v29 }
 0x4d3   : > { %v897_v33 = vmul.f32 %v895_v29, %v891_v30  ;;  %v961_v34 = vadd.f32 %v960_v31, %v901_v32 }
 0x4d5   : > { %v903_v35 = vadd.f32 %v901_v32, %v897_v33  ;;  %v962_v36 = vmax.f32 %v961_v34, 0.0 }
 0x4d7   : > { %v904_v37 = vmax.f32 %v903_v35, 0.0  ;;  %968 = vst [vmem:[%s520_s19] sm:$0xff] %v962_v36 }
 0x4d9   : > { %967 = vst [vmem:[%s516_s23] sm:$0xff] %v904_v37 }
 0x4da PF: > { %s25_s29 = sadd.s32 1, %s1240_s29  }
 0x4db   : > { %p22_p4 = scmp.ge.s32.totalorder %s25_s29, 4  }
 0x4dd   :  { %24 = sbr.rel (!%p22_p4) target bundleno = 1 (0x1), region = 133 }

// kernel: simsiam_forward.5
= control target key start
LH: loop header
LB: loop body
LE: loop exit
PB: predicated region body
PF: predicated region fallthrough
CT: control target
= control target key end

     0   :  { %v1092_v0 = vmov 0.0   ;;  %vm1093_vm0 = vmmov 0   ;;  %vm71_vm1 = vcmask 261120   ;;  %vm117_vm2 = vcmask 254976   ;;  %s1401_s1 = inlined_call_operand.vmem [shape: bf16[32,32], index: 1, kind: input, shape index: {}]   ;;  %s1402_s0 = inlined_call_operand.vmem [shape: f32[2,2,32], index: 0, kind: input, shape index: {}]   ;;  %s1403_s4 = inlined_call_operand.vmem [shape: bf16[32,32], index: 4, kind: input, shape index: {}]   ;;  %s1404_s2 = inlined_call_operand.vmem [shape: f32[1,32], index: 2, kind: input, shape index: {}]   ;;  %s1405_s3 = inlined_call_operand.vmem [shape: f32[1,32], index: 3, kind: input, shape index: {}]   ;;  %s1406_s7 = inlined_call_operand.vmem [shape: bf16[32,32], index: 7, kind: input, shape index: {}]   ;;  %s1407_s5 = inlined_call_operand.vmem [shape: f32[1,32], index: 5, kind: input, shape index: {}]   ;;  %s1408_s6 = inlined_call_operand.vmem [shape: f32[1,32], index: 6, kind: input, shape index: {}]   ;;  %s1409_s10 = inlined_call_operand.vmem [shape: bf16[32,16], index: 10, kind: input, shape index: {}]   ;;  %s1410_s8 = inlined_call_operand.vmem [shape: f32[1,32], index: 8, kind: input, shape index: {}]   ;;  %s1411_s9 = inlined_call_operand.vmem [shape: f32[1,32], index: 9, kind: input, shape index: {}]   ;;  %s1412_s13 = inlined_call_operand.vmem [shape: bf16[16,32], index: 13, kind: input, shape index: {}]   ;;  %s1413_s11 = inlined_call_operand.vmem [shape: f32[1,16], index: 11, kind: input, shape index: {}]   ;;  %s1414_s12 = inlined_call_operand.vmem [shape: f32[1,16], index: 12, kind: input, shape index: {}]   ;;  %s1415_s14 = inlined_call_operand.vmem [shape: f32[1,32], index: 14, kind: input, shape index: {}]   ;;  %s1416_s15 = inlined_call_operand.vmem [shape: f32[2,1], index: 15, kind: output, shape index: {0}]   ;;  %s1417_s16 = inlined_call_operand.vmem [shape: f32[2,1], index: 16, kind: output, shape index: {1}]  }
   0x1   :  { %1419 = sst [smem:[#allocation2_spill]] %s1401_s1  ;;  %977 = vmatprep.subr.bf16.mxu0 %v1092_v0  ;;  %981 = vmatprep.mubr.msk.bf16.mxu0 %vm1093_vm0, %v1092_v0  ;;  %v53_v3 = vld [vmem:[%s1402_s0] sm:$0x3]  ;;  %v1208_v5 = vld [vmem:[%s1403_s4 + $0x8] sm:$0xff]   ;;  %vm420_vm3 = vcmask 123904   ;;  %vm476_vm4 = vcmask 130048  }
   0x2   :  { %s1420_s23 = sld [smem:[#allocation2_spill]]  ;;  %985 = vmatprep.subr.bf16.mxu1 %v1092_v0  ;;  %989 = vmatprep.mubr.msk.bf16.mxu1 %vm1093_vm0, %v1092_v0  ;;  %v54_v4 = vpack.c.bf16 %v53_v3, %v53_v3  ;;  %v1214_v6 = vld [vmem:[%s1403_s4] sm:$0xff]   ;;  %v1239_v41 = vld [vmem:[%s1406_s7 + $0x8] sm:$0xff]   ;;  %vm879_vm9 = vcmask 1024  }
   0x3   :  { %986 = vmatpush3.bf16.msra.mxu1 %v1208_v5  ;;  %v1224_v34 = vld [vmem:[%s1404_s2] ss:$0 sm:$0xff] }
   0x4   :  { %987 = vmatprep.subr.bf16.mxu1 %v1092_v0  ;;  %v1229_v36 = vld [vmem:[%s1405_s3] ss:$0 sm:$0xff] }
   0x5   :  { %v1246_v42 = vld [vmem:[%s1406_s7] sm:$0xff]  }
   0x7   :  { %988 = vmatpush3.bf16.msra.mxu1 %v1214_v6 }
   0x8   :  { %v1183_v1 = vld [vmem:[%s1420_s23 + $0x8] sm:$0xff]   ;;  %v1194_v2 = vld [vmem:[%s1420_s23] sm:$0xff]   ;;  %1001 = vmatprep.subr.bf16.mxu1 %v1092_v0 }
   0x9   :  { %978 = vmatpush3.bf16.msra.mxu0 %v1183_v1 }
   0xa   :  { %979 = vmatprep.subr.bf16.mxu0 %v1092_v0 }
   0xd   :  { %980 = vmatpush3.bf16.msra.mxu0 %v1194_v2 }
   0xe   :  { %993 = vmatprep.subr.bf16.mxu0 %v1092_v0 }
  0x10   :  { %982 = vmatmul.mubr.msk.bf16.vlgmr.msra.gmra.mxu0 %vm71_vm1, %v54_v4 }
  0x11   :  { %997 = vmatprep.mubr.msk.bf16.mxu0 %vm1093_vm0, %v1092_v0  ;;  %994 = vmatpush3.bf16.msra.mxu0 %v1239_v41 }
  0x12   :  { %995 = vmatprep.subr.bf16.mxu0 %v1092_v0 }
  0x15   :  { %996 = vmatpush3.bf16.msra.mxu0 %v1246_v42 }
  0x16   :  { %1009 = vmatprep.subr.bf16.mxu0 %v1092_v0 }
  0xd0   :  { %v109_v7 = vpop.f32.mrf.mxu0 }
  0xd1   :  { %v118_v8 = vsel %vm117_vm2, %v109_v7, 0.0  ;;  %v125_v9 = vmul.f32 %v109_v7, %v109_v7 }
  0xd2   :  { %v119_v10 = vrot.slane %v118_v8, 4  ;;  %v983_v11 = vpop.f32.mrf.mxu0 }
  0xd3   :  { %v126_v12 = vsel %vm117_vm2, %v125_v9, 0.0  ;;  %v1255_v11 = vld [vmem:[%s1407_s5] ss:$0 sm:$0xff] }
  0xd4   :  { %v120_v13 = vadd.f32 %v119_v10, %v118_v8  ;;  %v127_v14 = vrot.slane %v126_v12, 4  ;;  %v112_v15 = vpop.f32.mrf.mxu0 }
  0xd6   :  { %v121_v16 = vrot.slane %v120_v13, 2  ;;  %v128_v17 = vadd.f32 %v127_v14, %v126_v12  ;;  %v984_v18 = vpop.f32.mrf.mxu0 }
  0xd7   :  { %v1270_v18 = vld [vmem:[%s1409_s10 + $0x8] sm:$0xff]  }
  0xd8   :  { %v122_v19 = vadd.f32 %v121_v16, %v120_v13  ;;  %v129_v20 = vrot.slane %v128_v17, 2  ;;  %v1260_v13 = vld [vmem:[%s1408_s6] ss:$0 sm:$0xff] }
  0xda   :  { %v123_v21 = vrot.slane %v122_v19, 1  ;;  %v130_v22 = vadd.f32 %v129_v20, %v128_v17 }
  0xdc   :  { %v124_v23 = vadd.f32 %v123_v21, %v122_v19  ;;  %v131_v24 = vrot.slane %v130_v22, 1  ;;  %v1277_v19 = vld [vmem:[%s1409_s10] sm:$0xff]  }
  0xde   :  { %v132_v25 = vadd.f32 %v131_v24, %v130_v22  ;;  %v133_v26 = vmul.f32 0.5, %v124_v23 }
  0xe0   :  { %v134_v27 = vmul.f32 0.5, %v132_v25  ;;  %v135_v28 = vmul.f32 %v133_v26, %v133_v26  ;;  %v138_v32 = vsub.f32 %v109_v7, %v133_v26 }
  0xe2   :  { %v136_v29 = vsub.f32 %v134_v27, %v135_v28 }
  0xe4   :  { %v137_v30 = vmax.f32 %v136_v29, 0.0 }
  0xe6   :  { %v139_v31 = vadd.f32 1e-05, %v137_v30 }
  0xe8   :  { %1064 = vrsqrt.f32 %v139_v31 }
  0xf5   :  { %v1065_v33 = vpop.eup %1064 }
  0xf6   :  { %v141_v35 = vmul.f32 %v1065_v33, %v138_v32 }
  0xf8   :  { %v148_v37 = vmul.f32 %v1224_v34, %v141_v35 }
  0xfa   :  { %v155_v38 = vadd.f32 %v1229_v36, %v148_v37 }
  0xfc   :  { %v156_v39 = vmax.f32 %v155_v38, 0.0 }
  0xfe   :  { %v157_v40 = vpack.c.bf16 %v156_v39, %v156_v39 }
 0x100   :  { %990 = vmatmul.mubr.msk.bf16.vlgmr.msra.gmra.mxu1 %vm71_vm1, %v157_v40 }
 0x101   :  { %1005 = vmatprep.mubr.msk.bf16.mxu1 %vm1093_vm0, %v1092_v0  ;;  %1002 = vmatpush3.bf16.msra.mxu1 %v1270_v18 }
 0x102   :  { %1003 = vmatprep.subr.bf16.mxu1 %v1092_v0 }
 0x105   :  { %1004 = vmatpush3.bf16.msra.mxu1 %v1277_v19 }
 0x106   :  { %1015 = vmatprep.subr.bf16.mxu1 %v1092_v0 }
 0x1c0   :  { %v211_v43 = vpop.f32.mrf.mxu1 }
 0x1c1   :  { %v219_v44 = vsel %vm117_vm2, %v211_v43, 0.0  ;;  %v226_v45 = vmul.f32 %v211_v43, %v211_v43 }
 0x1c2   :  { %v220_v46 = vrot.slane %v219_v44, 4  ;;  %v991_v47 = vpop.f32.mrf.mxu1 }
 0x1c3   :  { %v227_v48 = vsel %vm117_vm2, %v226_v45, 0.0 }
 0x1c4   :  { %v221_v49 = vadd.f32 %v220_v46, %v219_v44  ;;  %v228_v50 = vrot.slane %v227_v48, 4  ;;  %v214_v51 = vpop.f32.mrf.mxu1 }
 0x1c5   :  { %v1286_v51 = vld [vmem:[%s1410_s8] ss:$0 sm:$0xff] }
 0x1c6   :  { %v222_v52 = vrot.slane %v221_v49, 2  ;;  %v229_v53 = vadd.f32 %v228_v50, %v227_v48  ;;  %v992_v54 = vpop.f32.mrf.mxu1 }
 0x1c8   :  { %v223_v55 = vadd.f32 %v222_v52, %v221_v49  ;;  %v230_v56 = vrot.slane %v229_v53, 2 }
 0x1ca   :  { %v224_v57 = vrot.slane %v223_v55, 1  ;;  %v231_v58 = vadd.f32 %v230_v56, %v229_v53  ;;  %v1291_v53 = vld [vmem:[%s1411_s9] ss:$0 sm:$0xff] }
 0x1cc   :  { %v225_v59 = vadd.f32 %v224_v57, %v223_v55  ;;  %v232_v60 = vrot.slane %v231_v58, 1  ;;  %v943_v57 = vld [vmem:[%s1402_s0 + $0x2] sm:$0x3] }
 0x1ce   :  { %v233_v61 = vadd.f32 %v232_v60, %v231_v58  ;;  %v234_v62 = vmul.f32 0.5, %v225_v59  ;;  %v522_v58 = vpack.c.bf16 %v943_v57, %v943_v57 }
 0x1d0   :  { %v235_v63 = vmul.f32 0.5, %v233_v61  ;;  %v236_v3 = vmul.f32 %v234_v62, %v234_v62  ;;  %v239_v9 = vsub.f32 %v211_v43, %v234_v62 }
 0x1d2   :  { %v237_v4 = vsub.f32 %v235_v63, %v236_v3 }
 0x1d4   :  { %v238_v7 = vmax.f32 %v237_v4, 0.0 }
 0x1d6   :  { %v240_v8 = vadd.f32 1e-05, %v238_v7 }
 0x1d8   :  { %1066 = vrsqrt.f32 %v240_v8 }
 0x1e5   :  { %v1067_v10 = vpop.eup %1066 }
 0x1e6   :  { %v242_v12 = vmul.f32 %v1067_v10, %v239_v9 }
 0x1e8   :  { %v249_v14 = vmul.f32 %v1255_v11, %v242_v12 }
 0x1ea   :  { %v256_v15 = vadd.f32 %v1260_v13, %v249_v14 }
 0x1ec   :  { %v257_v16 = vmax.f32 %v256_v15, 0.0 }
 0x1ee   :  { %v258_v17 = vpack.c.bf16 %v257_v16, %v257_v16 }
 0x1f0   :  { %998 = vmatmul.mubr.msk.bf16.vlgmr.msra.gmra.mxu0 %vm71_vm1, %v258_v17 }
 0x1f1   :  { %1011 = vmatprep.mubr.msk.bf16.mxu0 %vm1093_vm0, %v1092_v0 }
 0x2b0   :  { %v312_v20 = vpop.f32.mrf.mxu0 }
 0x2b1   :  { %v320_v21 = vsel %vm117_vm2, %v312_v20, 0.0  ;;  %v327_v22 = vmul.f32 %v312_v20, %v312_v20 }
 0x2b2   :  { %v321_v23 = vrot.slane %v320_v21, 4  ;;  %v999_v24 = vpop.f32.mrf.mxu0 }
 0x2b3   :  { %v328_v25 = vsel %vm117_vm2, %v327_v22, 0.0 }
 0x2b4   :  { %v322_v26 = vadd.f32 %v321_v23, %v320_v21  ;;  %v329_v27 = vrot.slane %v328_v25, 4  ;;  %v315_v28 = vpop.f32.mrf.mxu0 }
 0x2b6   :  { %v323_v29 = vrot.slane %v322_v26, 2  ;;  %v330_v30 = vadd.f32 %v329_v27, %v328_v25  ;;  %v1000_v31 = vpop.f32.mrf.mxu0 }
 0x2b8   :  { %v324_v32 = vadd.f32 %v323_v29, %v322_v26  ;;  %v331_v33 = vrot.slane %v330_v30, 2 }
 0x2ba   :  { %v325_v35 = vrot.slane %v324_v32, 1  ;;  %v332_v37 = vadd.f32 %v331_v33, %v330_v30 }
 0x2bc   :  { %v326_v38 = vadd.f32 %v325_v35, %v324_v32  ;;  %v333_v39 = vrot.slane %v332_v37, 1 }
 0x2be   :  { %v334_v40 = vadd.f32 %v333_v39, %v332_v37  ;;  %v335_v43 = vmul.f32 0.5, %v326_v38 }
 0x2c0   :  { %v336_v44 = vmul.f32 0.5, %v334_v40  ;;  %v337_v45 = vmul.f32 %v335_v43, %v335_v43  ;;  %v340_v49 = vsub.f32 %v312_v20, %v335_v43 }
 0x2c2   :  { %v338_v46 = vsub.f32 %v336_v44, %v337_v45 }
 0x2c4   :  { %v339_v47 = vmax.f32 %v338_v46, 0.0 }
 0x2c6   :  { %v341_v48 = vadd.f32 1e-05, %v339_v47 }
 0x2c8   :  { %1068 = vrsqrt.f32 %v341_v48 }
 0x2d5   :  { %v1069_v50 = vpop.eup %1068 }
 0x2d6   :  { %v343_v52 = vmul.f32 %v1069_v50, %v340_v49 }
 0x2d8   :  { %v350_v54 = vmul.f32 %v1286_v51, %v343_v52 }
 0x2da   :  { %v1295_v55 = vadd.f32 %v1291_v53, %v350_v54 }
 0x2dc   :  { %v358_v56 = vpack.c.bf16 %v1295_v55, %v1295_v55 }
 0x2de   :  { %1006 = vmatmul.mubr.msk.bf16.vlgmr.msra.gmra.mxu1 %vm71_vm1, %v358_v56 }
 0x2df   :  { %1016 = vmatpush3.bf16.msra.mxu1 %v1183_v1  ;;  %1019 = vmatprep.mubr.msk.bf16.mxu1 %vm1093_vm0, %v1092_v0  ;;  %v1319_v1 = vld [vmem:[%s1412_s13] sm:$0xff]  }
 0x2e0   :  { %1017 = vmatprep.subr.bf16.mxu1 %v1092_v0  ;;  %1010 = vmatpush3.bf16.msra.mxu0 %v1319_v1 }
 0x2e1   :  { %1023 = vmatprep.subr.bf16.mxu0 %v1092_v0 }
 0x2e3   :  { %1018 = vmatpush3.bf16.msra.mxu1 %v1194_v2 }
 0x2e4   :  { %1031 = vmatprep.subr.bf16.mxu1 %v1092_v0 }
 0x2e6   :  { %1020 = vmatmul.mubr.msk.bf16.vlgmr.msra.gmra.mxu1 %vm71_vm1, %v522_v58 }
 0x2e7   :  { %1032 = vmatpush3.bf16.msra.mxu1 %v1239_v41  ;;  %1035 = vmatprep.mubr.msk.bf16.mxu1 %vm1093_vm0, %v1092_v0 }
 0x2e8   :  { %1033 = vmatprep.subr.bf16.mxu1 %v1092_v0 }
 0x2eb   :  { %1034 = vmatpush3.bf16.msra.mxu1 %v1246_v42 }
 0x2ec   :  { %1047 = vmatprep.subr.bf16.mxu1 %v1092_v0 }
 0x39e   :  { %v412_v2 = vpop.f32.mrf.mxu1 }
 0x39f   :  { %v421_v41 = vsel %vm420_vm3, %v412_v2, 0.0  ;;  %v428_v59 = vmul.f32 %v412_v2, %v412_v2 }
 0x3a0   :  { %v422_v60 = vrot.slane %v421_v41, 4  ;;  %v1007_v61 = vpop.f32.mrf.mxu1 }
 0x3a1   :  { %v429_v42 = vsel %vm420_vm3, %v428_v59, 0.0  ;;  %v1330_v59 = vld [vmem:[%s1413_s11] ss:$0 sm:$0xff] }
 0x3a2   :  { %v423_v62 = vadd.f32 %v422_v60, %v421_v41  ;;  %v430_v63 = vrot.slane %v429_v42, 4  ;;  %v415_v3 = vpop.f32.mrf.mxu1  ;;  %v1335_v61 = vld [vmem:[%s1414_s12] ss:$0 sm:$0xff] }
 0x3a4   :  { %v424_v4 = vrot.slane %v423_v62, 2  ;;  %v431_v7 = vadd.f32 %v430_v63, %v429_v42  ;;  %v1008_v8 = vpop.f32.mrf.mxu1 }
 0x3a6   :  { %v425_v9 = vadd.f32 %v424_v4, %v423_v62  ;;  %v432_v10 = vrot.slane %v431_v7, 2  ;;  %v560_v12 = vpop.f32.mrf.mxu1 }
 0x3a7   :  { %v566_v14 = vsel %vm117_vm2, %v560_v12, 0.0  ;;  %v573_v15 = vmul.f32 %v560_v12, %v560_v12 }
 0x3a8   :  { %v426_v16 = vrot.slane %v425_v9, 1  ;;  %v433_v17 = vadd.f32 %v432_v10, %v431_v7  ;;  %v567_v20 = vrot.slane %v566_v14, 4  ;;  %v1021_v21 = vpop.f32.mrf.mxu1 }
 0x3a9   :  { %v574_v22 = vsel %vm117_vm2, %v573_v15, 0.0 }
 0x3aa   :  { %v427_v23 = vadd.f32 %v426_v16, %v425_v9  ;;  %v434_v24 = vrot.slane %v433_v17, 1  ;;  %v568_v25 = vadd.f32 %v567_v20, %v566_v14  ;;  %v575_v26 = vrot.slane %v574_v22, 4  ;;  %v563_v27 = vpop.f32.mrf.mxu1 }
 0x3ac   :  { %v435_v28 = vadd.f32 %v434_v24, %v433_v17  ;;  %v436_v29 = vmul.f32 0.5, %v427_v23  ;;  %v569_v30 = vrot.slane %v568_v25, 2  ;;  %v576_v31 = vadd.f32 %v575_v26, %v574_v22  ;;  %v1022_v32 = vpop.f32.mrf.mxu1 }
 0x3ae   :  { %v437_v33 = vmul.f32 0.5, %v435_v28  ;;  %v438_v35 = vmul.f32 %v436_v29, %v436_v29  ;;  %v570_v37 = vadd.f32 %v569_v30, %v568_v25  ;;  %v577_v38 = vrot.slane %v576_v31, 2 }
 0x3af   :  { %v441_v58 = vsub.f32 %v412_v2, %v436_v29 }
 0x3b0   :  { %v439_v39 = vsub.f32 %v437_v33, %v438_v35  ;;  %v571_v40 = vrot.slane %v570_v37, 1  ;;  %v578_v43 = vadd.f32 %v577_v38, %v576_v31 }
 0x3b2   :  { %v440_v44 = vmax.f32 %v439_v39, 0.0  ;;  %v572_v45 = vadd.f32 %v571_v40, %v570_v37  ;;  %v579_v46 = vrot.slane %v578_v43, 1 }
 0x3b4   :  { %v442_v47 = vadd.f32 1e-05, %v440_v44  ;;  %v581_v48 = vmul.f32 0.5, %v572_v45  ;;  %v580_v49 = vadd.f32 %v579_v46, %v578_v43 }
 0x3b6   :  { %1070 = vrsqrt.f32 %v442_v47  ;;  %v583_v50 = vmul.f32 %v581_v48, %v581_v48  ;;  %v582_v52 = vmul.f32 0.5, %v580_v49  ;;  %v586_v3 = vsub.f32 %v560_v12, %v581_v48 }
 0x3b8   :  { %v584_v54 = vsub.f32 %v582_v52, %v583_v50 }
 0x3ba   :  { %v585_v56 = vmax.f32 %v584_v54, 0.0 }
 0x3bc   :  { %v587_v57 = vadd.f32 1e-05, %v585_v56 }
 0x3be   :  { %1072 = vrsqrt.f32 %v587_v57 }
 0x3c3   :  { %v1071_v41 = vpop.eup %1070 }
 0x3c4   :  { %v444_v60 = vmul.f32 %v1071_v41, %v441_v58 }
 0x3c6   :  { %v451_v42 = vmul.f32 %v1330_v59, %v444_v60 }
 0x3c8   :  { %v458_v62 = vadd.f32 %v1335_v61, %v451_v42 }
 0x3ca   :  { %v459_v63 = vmax.f32 %v458_v62, 0.0 }
 0x3cb   :  { %v1073_v2 = vpop.eup %1072 }
 0x3cc   :  { %v460_v4 = vpack.c.bf16 %v459_v63, %v459_v63  ;;  %v589_v7 = vmul.f32 %v1073_v2, %v586_v3 }
 0x3ce   :  { %1012 = vmatmul.mubr.msk.bf16.vlgmr.msra.gmra.mxu0 %vm476_vm4, %v460_v4  ;;  %v590_v8 = vmul.f32 %v1224_v34, %v589_v7 }
 0x3cf   :  { %1024 = vmatpush3.bf16.msra.mxu0 %v1208_v5  ;;  %1027 = vmatprep.mubr.msk.bf16.mxu0 %vm1093_vm0, %v1092_v0  ;;  %v1357_v5 = vld [vmem:[%s1415_s14] ss:$0 sm:$0xff] }
 0x3d0   :  { %1025 = vmatprep.subr.bf16.mxu0 %v1092_v0  ;;  %v591_v9 = vadd.f32 %v1229_v36, %v590_v8 }
 0x3d2   :  { %v592_v10 = vmax.f32 %v591_v9, 0.0 }
 0x3d3   :  { %1026 = vmatpush3.bf16.msra.mxu0 %v1214_v6 }
 0x3d4   :  { %1039 = vmatprep.subr.bf16.mxu0 %v1092_v0  ;;  %v593_v12 = vpack.c.bf16 %v592_v10, %v592_v10 }
 0x3d6   :  { %1028 = vmatmul.mubr.msk.bf16.vlgmr.msra.gmra.mxu0 %vm71_vm1, %v593_v12 }
 0x3d7   :  { %1040 = vmatpush3.bf16.msra.mxu0 %v1270_v18  ;;  %1043 = vmatprep.mubr.msk.bf16.mxu0 %vm1093_vm0, %v1092_v0 }
 0x3d8   :  { %1041 = vmatprep.subr.bf16.mxu0 %v1092_v0 }
 0x3db   :  { %1042 = vmatpush3.bf16.msra.mxu0 %v1277_v19 }
 0x48e   :  { %v514_v6 = vpop.f32.mrf.mxu0 }
 0x48f   :  { %v1360_v34 = vadd.f32 %v1357_v5, %v514_v6 }
 0x490   :  { %v1013_v36 = vpop.f32.mrf.mxu0 }
 0x491   :  { %v853_v18 = vmul.f32 %v1360_v34, %v1360_v34 }
 0x492   :  { %v517_v14 = vpop.f32.mrf.mxu0 }
 0x493   :  { %v854_v15 = vsel %vm117_vm2, %v853_v18, 0.0 }
 0x494   :  { %855 = vadd.xlane.f32.xlu0 %v854_v15  ;;  %v1014_v16 = vpop.f32.mrf.mxu0 }
 0x496   :  { %v631_v17 = vpop.f32.mrf.mxu0 }
 0x497   :  { %v637_v19 = vsel %vm117_vm2, %v631_v17, 0.0  ;;  %v644_v20 = vmul.f32 %v631_v17, %v631_v17 }
 0x498   :  { %v638_v21 = vrot.slane %v637_v19, 4  ;;  %v1029_v22 = vpop.f32.mrf.mxu0 }
 0x499   :  { %v645_v23 = vsel %vm117_vm2, %v644_v20, 0.0 }
 0x49a   :  { %v639_v24 = vadd.f32 %v638_v21, %v637_v19  ;;  %v646_v25 = vrot.slane %v645_v23, 4  ;;  %v634_v26 = vpop.f32.mrf.mxu0 }
 0x49c   :  { %v640_v27 = vrot.slane %v639_v24, 2  ;;  %v647_v28 = vadd.f32 %v646_v25, %v645_v23  ;;  %v1030_v29 = vpop.f32.mrf.mxu0 }
 0x49e   :  { %v641_v30 = vadd.f32 %v640_v27, %v639_v24  ;;  %v648_v31 = vrot.slane %v647_v28, 2 }
 0x4a0   :  { %v642_v32 = vrot.slane %v641_v30, 1  ;;  %v649_v33 = vadd.f32 %v648_v31, %v647_v28 }
 0x4a2   :  { %v643_v35 = vadd.f32 %v642_v32, %v641_v30  ;;  %v650_v37 = vrot.slane %v649_v33, 1 }
 0x4a4   :  { %v651_v38 = vadd.f32 %v650_v37, %v649_v33  ;;  %v652_v39 = vmul.f32 0.5, %v643_v35 }
 0x4a6   :  { %v653_v40 = vmul.f32 0.5, %v651_v38  ;;  %v654_v43 = vmul.f32 %v652_v39, %v652_v39  ;;  %v657_v47 = vsub.f32 %v631_v17, %v652_v39 }
 0x4a8   :  { %v655_v44 = vsub.f32 %v653_v40, %v654_v43 }
 0x4aa   :  { %v656_v45 = vmax.f32 %v655_v44, 0.0 }
 0x4ac   :  { %v658_v46 = vadd.f32 1e-05, %v656_v45 }
 0x4ae   :  { %1074 = vrsqrt.f32 %v658_v46 }
 0x4bb   :  { %v1075_v48 = vpop.eup %1074 }
 0x4bc   :  { %v660_v49 = vmul.f32 %v1075_v48, %v657_v47 }
 0x4be   :  { %v661_v50 = vmul.f32 %v1255_v11, %v660_v49 }
 0x4c0   :  { %v662_v52 = vadd.f32 %v1260_v13, %v661_v50 }
 0x4c2   :  { %v663_v54 = vmax.f32 %v662_v52, 0.0 }
 0x4c4   :  { %v664_v56 = vpack.c.bf16 %v663_v54, %v663_v54 }
 0x4c6   :  { %1036 = vmatmul.mubr.msk.bf16.vlgmr.msra.gmra.mxu1 %vm71_vm1, %v664_v56 }
 0x4c7   :  { %1048 = vmatpush3.bf16.msra.mxu1 %v1319_v1  ;;  %1049 = vmatprep.mubr.msk.bf16.mxu1 %vm1093_vm0, %v1092_v0 }
 0x51d   :  { %v856_v28 = vpop.xlane.xlu0 %855 }
 0x51e   :  { %vm859_vm5 = vcmp.eq.f32.partialorder %v856_v28, inf  ;;  %v862_v33 = vand.u32 2147483648, %v856_v28  ;;  %vm861_vm7 = vcmp.eq.f32.partialorder %v856_v28, 0.0 }
 0x586   :  { %v702_v57 = vpop.f32.mrf.mxu1 }
 0x587   :  { %v708_v58 = vsel %vm117_vm2, %v702_v57, 0.0  ;;  %v715_v41 = vmul.f32 %v702_v57, %v702_v57 }
 0x588   :  { %v709_v60 = vrot.slane %v708_v58, 4  ;;  %v1037_v42 = vpop.f32.mrf.mxu1 }
 0x589   :  { %v716_v62 = vsel %vm117_vm2, %v715_v41, 0.0 }
 0x58a   :  { %v710_v11 = vadd.f32 %v709_v60, %v708_v58  ;;  %v717_v63 = vrot.slane %v716_v62, 4  ;;  %v705_v13 = vpop.f32.mrf.mxu1 }
 0x58c   :  { %v711_v3 = vrot.slane %v710_v11, 2  ;;  %v718_v2 = vadd.f32 %v717_v63, %v716_v62  ;;  %v1038_v4 = vpop.f32.mrf.mxu1 }
 0x58e   :  { %v712_v7 = vadd.f32 %v711_v3, %v710_v11  ;;  %v719_v8 = vrot.slane %v718_v2, 2 }
 0x590   :  { %v713_v1 = vrot.slane %v712_v7, 1  ;;  %v720_v9 = vadd.f32 %v719_v8, %v718_v2 }
 0x592   :  { %v714_v10 = vadd.f32 %v713_v1, %v712_v7  ;;  %v721_v0 = vrot.slane %v720_v9, 1 }
 0x594   :  { %v722_v12 = vadd.f32 %v721_v0, %v720_v9  ;;  %v723_v6 = vmul.f32 0.5, %v714_v10 }
 0x596   :  { %v724_v36 = vmul.f32 0.5, %v722_v12  ;;  %v725_v18 = vmul.f32 %v723_v6, %v723_v6  ;;  %v728_v17 = vsub.f32 %v702_v57, %v723_v6 }
 0x598   :  { %v726_v14 = vsub.f32 %v724_v36, %v725_v18 }
 0x59a   :  { %v727_v15 = vmax.f32 %v726_v14, 0.0 }
 0x59c   :  { %v729_v16 = vadd.f32 1e-05, %v727_v15 }
 0x59e   :  { %1076 = vrsqrt.f32 %v729_v16 }
 0x59f   :  { %1078 = vrsqrt.f32 %v856_v28 }
 0x5ab   :  { %v1077_v19 = vpop.eup %1076 }
 0x5ac   :  { %v731_v20 = vmul.f32 %v1077_v19, %v728_v17  ;;  %v1079_v30 = vpop.eup %1078 }
 0x5ae   :  { %v732_v21 = vmul.f32 %v1286_v51, %v731_v20  ;;  %v858_v51 = vmul.f32 %v1079_v30, %v856_v28 }
 0x5b0   :  { %v733_v22 = vadd.f32 %v1291_v53, %v732_v21  ;;  %v860_v53 = vsel %vm859_vm5, %v856_v28, %v858_v51 }
 0x5b2   :  { %v734_v23 = vpack.c.bf16 %v733_v22, %v733_v22  ;;  %v864_v24 = vmul.f32 %v733_v22, %v733_v22  ;;  %v849_v26 = vmul.f32 %v733_v22, %v1360_v34  ;;  %v863_v34 = vsel %vm861_vm7, %v862_v33, %v860_v53 }
 0x5b4   :  { %1044 = vmatmul.mubr.msk.bf16.vlgmr.msra.gmra.mxu0 %vm71_vm1, %v734_v23  ;;  %v865_v25 = vsel %vm117_vm2, %v864_v24, 0.0  ;;  %v850_v27 = vsel %vm117_vm2, %v849_v26, 0.0  ;;  %v896_v23 = vmul.f32 %v1295_v55, %v1295_v55 }
 0x5b5   :  { %866 = vadd.xlane.f32.xlu0 %v865_v25 }
 0x5b9   :  { %851 = vadd.xlane.f32.xlu0 %v850_v27 }
 0x63e   :  { %v867_v29 = vpop.xlane.xlu0 %866 }
 0x63f   :  { %1080 = vrsqrt.f32 %v867_v29  ;;  %vm870_vm6 = vcmp.eq.f32.partialorder %v867_v29, inf  ;;  %v873_v35 = vand.u32 2147483648, %v867_v29  ;;  %vm872_vm8 = vcmp.eq.f32.partialorder %v867_v29, 0.0 }
 0x642   :  { %v852_v44 = vpop.xlane.xlu0 %851 }
 0x64c   :  { %v1081_v31 = vpop.eup %1080 }
 0x64d   :  { %v869_v32 = vmul.f32 %v1081_v31, %v867_v29 }
 0x64f   :  { %v871_v37 = vsel %vm870_vm6, %v867_v29, %v869_v32 }
 0x650   :  { %v874_v38 = vsel %vm872_vm8, %v873_v35, %v871_v37 }
 0x651   :  { %v875_v39 = vmul.f32 %v874_v38, %v863_v34 }
 0x653   :  { %v876_v40 = vmax.f32 %v875_v39, 1e-08 }
 0x655   :  { %1082 = vrcp.f32 %v876_v40 }
 0x662   :  { %v1083_v43 = vpop.eup %1082 }
 0x663   :  { %v878_v45 = vmul.f32 %v1083_v43, %v852_v44 }
 0x665   :  { %880 = vst.msk [vmem:[%s1416_s15] sm:$0x3] %vm879_vm9, %v878_v45 }
 0x674   :  { %v772_v46 = vpop.f32.mrf.mxu0 }
 0x675   :  { %v778_v47 = vsel %vm420_vm3, %v772_v46, 0.0  ;;  %v785_v48 = vmul.f32 %v772_v46, %v772_v46 }
 0x676   :  { %v779_v49 = vrot.slane %v778_v47, 4  ;;  %v1045_v50 = vpop.f32.mrf.mxu0 }
 0x677   :  { %v786_v52 = vsel %vm420_vm3, %v785_v48, 0.0 }
 0x678   :  { %v780_v54 = vadd.f32 %v779_v49, %v778_v47  ;;  %v787_v56 = vrot.slane %v786_v52, 4  ;;  %v775_v57 = vpop.f32.mrf.mxu0 }
 0x67a   :  { %v781_v58 = vrot.slane %v780_v54, 2  ;;  %v788_v41 = vadd.f32 %v787_v56, %v786_v52  ;;  %v1046_v60 = vpop.f32.mrf.mxu0 }
 0x67c   :  { %v782_v42 = vadd.f32 %v781_v58, %v780_v54  ;;  %v789_v62 = vrot.slane %v788_v41, 2 }
 0x67e   :  { %v783_v11 = vrot.slane %v782_v42, 1  ;;  %v790_v63 = vadd.f32 %v789_v62, %v788_v41 }
 0x680   :  { %v784_v13 = vadd.f32 %v783_v11, %v782_v42  ;;  %v791_v3 = vrot.slane %v790_v63, 1 }
 0x682   :  { %v792_v2 = vadd.f32 %v791_v3, %v790_v63  ;;  %v793_v4 = vmul.f32 0.5, %v784_v13 }
 0x684   :  { %v794_v7 = vmul.f32 0.5, %v792_v2  ;;  %v795_v8 = vmul.f32 %v793_v4, %v793_v4  ;;  %v798_v0 = vsub.f32 %v772_v46, %v793_v4 }
 0x686   :  { %v796_v1 = vsub.f32 %v794_v7, %v795_v8 }
 0x688   :  { %v797_v9 = vmax.f32 %v796_v1, 0.0 }
 0x68a   :  { %v799_v10 = vadd.f32 1e-05, %v797_v9 }
 0x68c   :  { %1084 = vrsqrt.f32 %v799_v10 }
 0x699   :  { %v1085_v12 = vpop.eup %1084 }
 0x69a   :  { %v801_v6 = vmul.f32 %v1085_v12, %v798_v0 }
 0x69c   :  { %v802_v36 = vmul.f32 %v1330_v59, %v801_v6  ;;  %v897_v59 = vsel %vm117_vm2, %v896_v23, 0.0 }
 0x69e   :  { %v803_v18 = vadd.f32 %v1335_v61, %v802_v36 }
 0x6a0   :  { %v804_v14 = vmax.f32 %v803_v18, 0.0 }
 0x6a2   :  { %v805_v15 = vpack.c.bf16 %v804_v14, %v804_v14 }
 0x6a4   :  { %1050 = vmatmul.mubr.msk.bf16.vlgmr.msra.gmra.mxu1 %vm476_vm4, %v805_v15 }
 0x764   :  { %v843_v16 = vpop.f32.mrf.mxu1 }
 0x765   :  { %v844_v17 = vadd.f32 %v1357_v5, %v843_v16 }
 0x766   :  { %v1051_v19 = vpop.f32.mrf.mxu1 }
 0x767   :  { %v885_v20 = vmul.f32 %v844_v17, %v844_v17  ;;  %v881_v61 = vmul.f32 %v844_v17, %v1295_v55 }
 0x768   :  { %v846_v21 = vpop.f32.mrf.mxu1 }
 0x769   :  { %v886_v22 = vsel %vm117_vm2, %v885_v20, 0.0  ;;  %v882_v25 = vsel %vm117_vm2, %v881_v61, 0.0 }
 0x76a   :  { %887 = vadd.xlane.f32.xlu1 %v886_v22  ;;  %v1052_v24 = vpop.f32.mrf.mxu1 }
 0x76e   :  { %898 = vadd.xlane.f32.xlu1 %v897_v59 }
 0x772   :  { %883 = vadd.xlane.f32.xlu1 %v882_v25 }
 0x7f3   :  { %v888_v26 = vpop.xlane.xlu1 %887 }
 0x7f4   :  { %1086 = vrsqrt.f32 %v888_v26  ;;  %vm891_vm10 = vcmp.eq.f32.partialorder %v888_v26, inf  ;;  %v894_v31 = vand.u32 2147483648, %v888_v26  ;;  %vm893_vm12 = vcmp.eq.f32.partialorder %v888_v26, 0.0 }
 0x7f7   :  { %v899_v5 = vpop.xlane.xlu1 %898 }
 0x7f8   :  { %1088 = vrsqrt.f32 %v899_v5  ;;  %vm902_vm11 = vcmp.eq.f32.partialorder %v899_v5, inf  ;;  %v905_v53 = vand.u32 2147483648, %v899_v5  ;;  %vm904_vm13 = vcmp.eq.f32.partialorder %v899_v5, 0.0 }
 0x7fb   :  { %v884_v38 = vpop.xlane.xlu1 %883 }
 0x801   :  { %v1087_v27 = vpop.eup %1086 }
 0x802   :  { %v890_v28 = vmul.f32 %v1087_v27, %v888_v26 }
 0x804   :  { %v892_v30 = vsel %vm891_vm10, %v888_v26, %v890_v28 }
 0x805   :  { %v1089_v29 = vpop.eup %1088  ;;  %v895_v55 = vsel %vm893_vm12, %v894_v31, %v892_v30 }
 0x806   :  { %v901_v51 = vmul.f32 %v1089_v29, %v899_v5 }
 0x808   :  { %v903_v32 = vsel %vm902_vm11, %v899_v5, %v901_v51 }
 0x809   :  { %v906_v33 = vsel %vm904_vm13, %v905_v53, %v903_v32 }
 0x80a   :  { %v907_v35 = vmul.f32 %v906_v33, %v895_v55 }
 0x80c   :  { %v908_v37 = vmax.f32 %v907_v35, 1e-08 }
 0x80e   :  { %1090 = vrcp.f32 %v908_v37 }
 0x81b   :  { %v1091_v34 = vpop.eup %1090 }
 0x81c   :  { %v910_v39 = vmul.f32 %v1091_v34, %v884_v38 }
 0x81e   :  { %911 = vst.msk [vmem:[%s1417_s16] sm:$0x3] %vm879_vm9, %v910_v39 }

</bundles_post_ra>
